<compile_context>
chip_gen: v6e
topology: v6e:2x2x1
jax: 0.10.0
libtpu: 0.0.40
codegen_flags: <defaults>
</compile_context>

<pallas_src>
import functools

import jax
import jax.numpy as jnp
from jax.experimental import pallas as pl
from jax.experimental.pallas import tpu as pltpu

ALPHA = 0.05      # retaining ratio of original node state inside the graph conv
_MAX_TB = 64      # the static-graph pack/unpack below is unrolled over TB


def _hardpurg_kernel(
    # per-grid-step inputs (one batch block of TB samples)
    x_aux_ref,      # (TB, N, AUX)  bf16
    h_prev_ref,     # (TB, N, C)    f32
    ad_ref,         # (TB, N, N)    bf16
    as_ref,         # (1,  N, N)    bf16 (static graph, shared by all samples)
    # parameters ((in, out) weights in bf16, biases (1, out) in f32)
    w_aux_ref, b_aux_ref,          # aux_info_reg
    w_lslc_d_ref, b_lslc_d_ref,    # dgcn.l_slc
    w_lslc_s_ref, b_lslc_s_ref,    # sgcn.l_slc
    w_p1_ref, b_p1_ref,            # purger1
    w_p2_ref, b_p2_ref,            # purger2
    w_fp_ref, b_fp_ref,            # final_purger
    # outputs
    hcat_ref,       # (TB, N, 2C)        h_cur_cat = [h_cur_d | h_cur_s]
    lat_d_ref,      # (depth, TB, N, C)  hop-aware latents over Ad
    lat_s_ref,      # (depth, TB, N, C)  hop-aware latents over As
    h_l_ref,        # (TB, N, C)
    # scratch
    hmix_ref,       # (TB*N, (depth+1)*C) bf16 — shared by both gconvs
    *,
    gconv_depth: int,
    c_dim: int,
):
    f32 = jnp.float32
    bf16 = jnp.bfloat16
    tb, n, _ = h_prev_ref.shape
    c = c_dim
    rows = tb * n

    def dense(x2, w_ref, b_ref=None):
        """Row-wise linear layer: bf16 x bf16 -> f32 accumulation on the MXU."""
        y = jnp.dot(x2.astype(bf16), w_ref[...], preferred_element_type=f32)
        if b_ref is not None:
            y = y + b_ref[...]
        return y

    def lslc(w_ref, b_ref):
        """One wide matmul over the packed h_mix (contraction (depth+1)*C)."""
        return dense(hmix_ref[...], w_ref, b_ref)

    # ---- z = h_prev * sigmoid(aux_info_reg(x_e_aux)) ----
    gate = jax.nn.sigmoid(
        dense(x_aux_ref[...].reshape(rows, -1), w_aux_ref, b_aux_ref))
    h_prev2 = h_prev_ref[...].reshape(rows, c)
    z2 = h_prev2 * gate
    z3 = z2.reshape(tb, n, c)

    # ---- dynamic-graph hop-aware conv (per-sample adjacency Ad) ----
    def gconv_dynamic(x3, a_b, lat_ref):
        x2 = x3.reshape(rows, c)
        hmix_ref[:, 0:c] = x2.astype(bf16)
        h3 = x3
        for hop in range(gconv_depth):
            prop = jnp.einsum('bvw,bwc->bvc', a_b, h3.astype(bf16),
                              preferred_element_type=f32)      # A @ h per sample
            h3 = ALPHA * x3 + (1.0 - ALPHA) * prop
            lat_ref[hop] = h3
            lo = (hop + 1) * c
            hmix_ref[:, lo:lo + c] = h3.reshape(rows, c).astype(bf16)

    # ---- static-graph hop-aware conv (one shared adjacency As) ----
    def gconv_static(x3, as2, lat_ref):
        x2 = x3.reshape(rows, c)
        hmix_ref[:, 0:c] = x2.astype(bf16)
        # Pack the TB samples lane-wise into one node-major slab so every hop
        # is a single (N,N) @ (N, TB*C) matmul (no (TB,N,N) broadcast of As,
        # far better MXU fill than TB tiny matmuls).
        # NOTE: pltpu.einshape("bnc->nbc", x3) is the non-unrolled alternative.
        xs = jnp.concatenate([x3[t] for t in range(tb)], axis=1)   # (N, TB*C)
        hs = xs
        for hop in range(gconv_depth):
            prop = jnp.dot(as2, hs.astype(bf16),
                           preferred_element_type=f32)             # (N, TB*C)
            hs = ALPHA * xs + (1.0 - ALPHA) * prop
            lo = (hop + 1) * c
            for t in range(tb):                                    # unpack samples
                h_t = hs[:, t * c:(t + 1) * c]                     # (N, C) f32
                lat_ref[hop, t] = h_t
                hmix_ref[t * n:(t + 1) * n, lo:lo + c] = h_t.astype(bf16)

    # --- dgcn over Ad, purger1 ---
    gconv_dynamic(z3, ad_ref[...], lat_d_ref)
    h_cur_d2 = lslc(w_lslc_d_ref, b_lslc_d_ref)                    # (rows, C) f32
    hcat_ref[:, :, 0:c] = h_cur_d2.reshape(tb, n, c)
    h_cur_d_2 = z2 - jax.nn.relu(dense(h_cur_d2, w_p1_ref, b_p1_ref))

    # --- sgcn over As, purger2 ---
    gconv_static(h_cur_d_2.reshape(tb, n, c), as_ref[0], lat_s_ref)
    h_cur_s2 = lslc(w_lslc_s_ref, b_lslc_s_ref)
    hcat_ref[:, :, c:2 * c] = h_cur_s2.reshape(tb, n, c)
    h_cur_s_2 = h_cur_d_2 - jax.nn.relu(dense(h_cur_s2, w_p2_ref, b_p2_ref))

    # --- final purger ---
    h_l2 = h_prev2 - jax.nn.relu(dense(h_cur_s_2, w_fp_ref, b_fp_ref))
    h_l_ref[...] = h_l2.reshape(tb, n, c)


# ------------------------------ tiling heuristics ------------------------------
def _chip_info():
    """Best-effort chip query: (VMEM capacity, #TensorCores, MXU row target)."""
    vmem_cap = 64 << 20              # v7x per-core VMEM — safe default everywhere
    kind = ""
    try:
        vmem_cap = max(int(pltpu.get_tpu_info().vmem_capacity_bytes), 32 << 20)
    except Exception:                # not on TPU / field unavailable — keep default
        pass
    try:
        kind = jax.devices()[0].device_kind.lower()
    except Exception:
        pass
    num_tc = 2 if "v7" in kind else 1                       # v7x: 2 TCs per chip
    target_rows = 512 if ("v5 lite" in kind or "v5e" in kind) else 256
    return vmem_cap, num_tc, target_rows


def _estimate_vmem_bytes(tb, n, c, aux, depth, param_bytes):
    """Rough per-grid-step VMEM working set (pipelined blocks double-buffered)."""
    f32, bf16, db = 4, 2, 2
    streamed = db * (tb * n * aux * bf16 + tb * n * c * f32 + tb * n * n * bf16)
    invariant = db * (n * n * bf16 + param_bytes)   # conservative: double-buffered
    outputs = db * (tb * n * 2 * c * f32 + 2 * depth * tb * n * c * f32
                    + tb * n * c * f32)
    scratch = tb * n * (depth + 1) * c * bf16       # h_mix
    live = 8 * tb * n * c * f32 + tb * n * n * f32  # in-flight temporaries headroom
    return streamed + invariant + outputs + scratch + live


def _choose_batch_tile(B, n, c, aux, depth, param_bytes, vmem_cap, num_tc,
                       target_rows):
    budget = int(0.75 * vmem_cap)
    tb = 1
    for cand in range(min(B, _MAX_TB), 0, -1):      # largest VMEM-fitting tile
        if _estimate_vmem_bytes(cand, n, c, aux, depth, param_bytes) <= budget:
            tb = cand
            break
    # Row target (MXU fill) is a goal, VMEM the hard constraint: stop growing
    # once the target is comfortably (4x) exceeded to keep some pipeline depth.
    tb = min(tb, max(1, pl.cdiv(4 * target_rows, n)))
    # Multi-TensorCore chips only (v7x): keep >= num_tc grid steps and prefer a
    # step count that divides evenly across cores ("parallel" grid axis).
    if num_tc >= 2 and B > 1:
        while tb > 1 and pl.cdiv(B, tb) < num_tc:
            tb -= 1
        for cand in range(tb, 0, -1):
            if pl.cdiv(B, cand) % num_tc == 0:
                tb = cand
                break
    return max(1, tb)


# --------------------------------- pallas_call ---------------------------------
def _build_call(*, TB, N, C, AUX, depth, n_blocks, B_pad, param_vals,
                vmem_limit, single_buffer_invariant):
    kern = functools.partial(_hardpurg_kernel, gconv_depth=depth, c_dim=C)

    inv_kwargs = ({"pipeline_mode": pl.Buffered(1)}
                  if single_buffer_invariant else {})

    def invariant_spec(shape):
        nd = len(shape)
        return pl.BlockSpec(shape, lambda b, _nd=nd: (0,) * _nd, **inv_kwargs)

    in_specs = [
        pl.BlockSpec((TB, N, AUX), lambda b: (b, 0, 0)),   # x_e_aux (bf16)
        pl.BlockSpec((TB, N, C), lambda b: (b, 0, 0)),     # h_prev  (f32)
        pl.BlockSpec((TB, N, N), lambda b: (b, 0, 0)),     # Ad      (bf16)
        invariant_spec((1, N, N)),                         # As      (bf16)
    ] + [invariant_spec(p.shape) for p in param_vals]

    out_shape = (
        jax.ShapeDtypeStruct((B_pad, N, 2 * C), jnp.float32),       # h_cur_cat
        jax.ShapeDtypeStruct((depth, B_pad, N, C), jnp.float32),    # h_latent_d
        jax.ShapeDtypeStruct((depth, B_pad, N, C), jnp.float32),    # h_latent_s
        jax.ShapeDtypeStruct((B_pad, N, C), jnp.float32),           # h_l
    )
    out_specs = (
        pl.BlockSpec((TB, N, 2 * C), lambda b: (b, 0, 0)),
        pl.BlockSpec((depth, TB, N, C), lambda b: (0, b, 0, 0)),
        pl.BlockSpec((depth, TB, N, C), lambda b: (0, b, 0, 0)),
        pl.BlockSpec((TB, N, C), lambda b: (b, 0, 0)),
    )
    # TODO(synk): for very large N (working set > budget even at TB=1) tile the
    # Ad/As contraction over node blocks (memory_space=pl.ANY + pltpu.emit_pipeline)
    # instead of keeping a full (N, N) block resident.
    return pl.pallas_call(
        kern,
        out_shape=out_shape,
        grid_spec=pltpu.PrefetchScalarGridSpec(
            num_scalar_prefetch=0,
            grid=(n_blocks,),
            in_specs=in_specs,
            out_specs=out_specs,
            scratch_shapes=[pltpu.VMEM((TB * N, (depth + 1) * C), jnp.bfloat16)],
        ),
        compiler_params=pltpu.CompilerParams(
            dimension_semantics=("parallel",),
            vmem_limit_bytes=vmem_limit,
        ),
    )


def hardpurg_layer_forward(x_e_aux, h_prev, As_soft, As, Ad, params, *,
                           gconv_depth, batch_tile=None):
    """Pallas implementation of _HARDPurGLayer.forward (LATENT_DGSL=False,
    bn=False, dropout=None, hop_aware_rectify_fn='mean',
    h_latent_d = h_latent_s = None, Ad_soft = None).

    `As_soft` is accepted for signature parity but unused (as in PyTorch)."""
    del As_soft
    B, N, C = h_prev.shape
    AUX = x_e_aux.shape[-1]
    depth = gconv_depth
    assert N % 8 == 0, "n_series must be a multiple of 8 (f32 sublane tiling)"
    assert C % 8 == 0, "channel dim must be a multiple of 8 (f32 sublane tiling)"
    assert As.shape == (1, N, N) and Ad.shape == (B, N, N)

    # Parameters: weights -> bf16 (MXU-native operands), biases stay f32.
    wkeys = ["w_aux", "w_lslc_d", "w_lslc_s", "w_p1", "w_p2", "w_fp"]
    bkeys = ["b_aux", "b_lslc_d", "b_lslc_s", "b_p1", "b_p2", "b_fp"]
    order = ["w_aux", "b_aux", "w_lslc_d", "b_lslc_d", "w_lslc_s", "b_lslc_s",
             "w_p1", "b_p1", "w_p2", "b_p2", "w_fp", "b_fp"]
    cast = {k: params[k].astype(jnp.bfloat16) for k in wkeys}
    cast.update({k: params[k].astype(jnp.float32) for k in bkeys})
    param_vals = [cast[k] for k in order]
    param_bytes = sum(int(p.size) * p.dtype.itemsize for p in param_vals)

    vmem_cap, num_tc, target_rows = _chip_info()
    TB = (batch_tile if batch_tile is not None else
          _choose_batch_tile(B, N, C, AUX, depth, param_bytes, vmem_cap,
                             num_tc, target_rows))
    n_blocks = pl.cdiv(B, TB)
    B_pad = n_blocks * TB
    if B_pad != B:                    # B % TB != 0: zero-pad, slice back below
        pad = B_pad - B
        pad3 = lambda a: jnp.pad(a, ((0, pad), (0, 0), (0, 0)))
        x_e_aux, h_prev, Ad = pad3(x_e_aux), pad3(h_prev), pad3(Ad)

    # bf16 streams: adjacency (dominant HBM bytes) + aux features.
    # TODO(synk): on v7x an fp8(e4m3) adjacency path (int8 + per-row scale on
    # v5e/v6e) would halve the Ad stream again — needs accuracy validation.
    x_aux_bf = x_e_aux.astype(jnp.bfloat16)
    Ad_bf = Ad.astype(jnp.bfloat16)
    As_bf = As.astype(jnp.bfloat16)
    h_prev = h_prev.astype(jnp.float32)

    est = _estimate_vmem_bytes(TB, N, C, AUX, depth, param_bytes)
    vmem_limit = int(max(32 << 20,
                         min(vmem_cap - (4 << 20), int(1.5 * est) + (8 << 20))))

    def _run(single_buffer_invariant):
        call = _build_call(TB=TB, N=N, C=C, AUX=AUX, depth=depth,
                           n_blocks=n_blocks, B_pad=B_pad,
                           param_vals=param_vals, vmem_limit=vmem_limit,
                           single_buffer_invariant=single_buffer_invariant)
        outs = call(x_aux_bf, h_prev, Ad_bf, As_bf, *param_vals)
        jax.block_until_ready(outs)
        return outs

    try:
        h_cat, lat_d, lat_s, h_l = _run(True)
    except Exception:   # pl.Buffered(1) unsupported -> default double-buffering
        h_cat, lat_d, lat_s, h_l = _run(False)

    if B_pad != B:
        h_cat, h_l = h_cat[:B], h_l[:B]
        lat_d, lat_s = lat_d[:, :B], lat_s[:, :B]
    h_latent_d = [lat_d[i] for i in range(depth)]      # contiguous leading slices
    h_latent_s = [lat_s[i] for i in range(depth)]
    return h_cat, (h_latent_d, h_latent_s), h_l, None


# ----------------------- pure-JAX reference (for verification) -----------------------
def _ref_forward(x_e_aux, h_prev, As, Ad, params, *, gconv_depth,
                 q_dtype=jnp.bfloat16):
    """Reference mirroring the kernel's quantization: all matmul operands
    (adjacency, activations, weights) bf16-quantized with f32 accumulation;
    every elementwise/purger op stays f32."""
    f32 = jnp.float32
    q = lambda a: a.astype(q_dtype).astype(f32)

    def lin(x, w, b):
        return q(x) @ q(w) + b

    z = h_prev * jax.nn.sigmoid(lin(x_e_aux, params["w_aux"], params["b_aux"]))

    def gconv(x, A, w, b):
        A_q = q(A)
        h, h_mix, lat = x, x, []
        for _ in range(gconv_depth):
            h = ALPHA * x + (1 - ALPHA) * jnp.einsum("bvw,bwc->bvc", A_q, q(h))
            lat.append(h)
            h_mix = jnp.concatenate([h_mix, h], axis=-1)
        return lin(h_mix, w, b), lat

    h_cur_d, lat_d = gconv(z, Ad, params["w_lslc_d"], params["b_lslc_d"])
    h_cur_d_ = z - jax.nn.relu(lin(h_cur_d, params["w_p1"], params["b_p1"]))
    As_b = jnp.broadcast_to(As, (h_prev.shape[0],) + As.shape[1:])
    h_cur_s, lat_s = gconv(h_cur_d_, As_b, params["w_lslc_s"], params["b_lslc_s"])
    h_cur_s_ = h_cur_d_ - jax.nn.relu(lin(h_cur_s, params["w_p2"], params["b_p2"]))
    h_l = h_prev - jax.nn.relu(lin(h_cur_s_, params["w_fp"], params["b_fp"]))
    h_cat = jnp.concatenate([h_cur_d, h_cur_s], axis=-1)
    return h_cat, (lat_d, lat_s), h_l


# ------------------------------------- main ------------------------------------------
if __name__ == "__main__":
    B, N, C, AUX, DEPTH = 2, 8, 32, 16, 2   # N=n_series, C = all gconv dims

    key = jax.random.PRNGKey(0)
    keys = jax.random.split(key, 20)

    def xavier(k, shape):
        fan_in, fan_out = shape[0], shape[1]
        limit = (6.0 / (fan_in + fan_out)) ** 0.5
        return jax.random.uniform(k, shape, jnp.float32, -limit, limit)

    # Parameters stored (in, out); biases (1, out). weight_norm at init == plain weight.
    params = {
        "w_aux": xavier(keys[0], (AUX, C)),
        "b_aux": jax.random.normal(keys[1], (1, C), jnp.float32) * 0.01,
        "w_lslc_d": xavier(keys[2], ((DEPTH + 1) * C, C)),
        "b_lslc_d": jax.random.normal(keys[3], (1, C), jnp.float32) * 0.01,
        "w_lslc_s": xavier(keys[4], ((DEPTH + 1) * C, C)),
        "b_lslc_s": jax.random.normal(keys[5], (1, C), jnp.float32) * 0.01,
        "w_p1": xavier(keys[6], (C, C)),
        "b_p1": jax.random.normal(keys[7], (1, C), jnp.float32) * 0.01,
        "w_p2": xavier(keys[8], (C, C)),
        "b_p2": jax.random.normal(keys[9], (1, C), jnp.float32) * 0.01,
        "w_fp": xavier(keys[10], (C, C)),
        "b_fp": jax.random.normal(keys[11], (1, C), jnp.float32) * 0.01,
    }

    # Inputs
    x_e_aux = jax.random.normal(keys[12], (B, N, AUX), jnp.float32)
    h_prev = jax.random.normal(keys[13], (B, N, C), jnp.float32)
    Ad_raw = jax.nn.relu(jax.random.normal(keys[14], (B, N, N), jnp.float32))
    Ad = Ad_raw / (jnp.sum(Ad_raw, axis=-1, keepdims=True) + 1e-6)   # dynamic graph
    As_raw = jax.nn.relu(jax.random.normal(keys[15], (1, N, N), jnp.float32))
    As = As_raw / (jnp.sum(As_raw, axis=-1, keepdims=True) + 1e-6)   # static graph
    As_soft = As_raw                                                 # unused in forward

    h_cat, (lat_d, lat_s), h_l, ad_soft_run = hardpurg_layer_forward(
        x_e_aux, h_prev, As_soft, As, Ad, params, gconv_depth=DEPTH
    )
    jax.block_until_ready((h_cat, h_l))

    # Verify against the quantization-matched reference.  Tolerance covers
    # bf16 rounding of intermediate activations on the matmul paths.
    h_cat_r, (lat_d_r, lat_s_r), h_l_r = _ref_forward(
        x_e_aux, h_prev, As, Ad, params, gconv_depth=DEPTH
    )
    ATOL = RTOL = 2e-3
    assert jnp.allclose(h_cat, h_cat_r, atol=ATOL, rtol=RTOL)
    assert jnp.allclose(h_l, h_l_r, atol=ATOL, rtol=RTOL)
    for a, b in zip(lat_d, lat_d_r):
        assert jnp.allclose(a, b, atol=ATOL, rtol=RTOL)
    for a, b in zip(lat_s, lat_s_r):
        assert jnp.allclose(a, b, atol=ATOL, rtol=RTOL)
    assert ad_soft_run is None

    print("KERNEL_OK")
</pallas_src>

<mosaic_0001>
module attributes {stable_mosaic.version = 11 : i64} {
  func.func @_hardpurg_kernel(%arg0: i32, %arg1: memref<2x8x16xbf16, #tpu.memory_space<vmem>>, %arg2: memref<2x8x32xf32, #tpu.memory_space<vmem>>, %arg3: memref<2x8x8xbf16, #tpu.memory_space<vmem>>, %arg4: memref<1x8x8xbf16, #tpu.memory_space<vmem>>, %arg5: memref<16x32xbf16, #tpu.memory_space<vmem>>, %arg6: memref<1x32xf32, #tpu.memory_space<vmem>>, %arg7: memref<96x32xbf16, #tpu.memory_space<vmem>>, %arg8: memref<1x32xf32, #tpu.memory_space<vmem>>, %arg9: memref<96x32xbf16, #tpu.memory_space<vmem>>, %arg10: memref<1x32xf32, #tpu.memory_space<vmem>>, %arg11: memref<32x32xbf16, #tpu.memory_space<vmem>>, %arg12: memref<1x32xf32, #tpu.memory_space<vmem>>, %arg13: memref<32x32xbf16, #tpu.memory_space<vmem>>, %arg14: memref<1x32xf32, #tpu.memory_space<vmem>>, %arg15: memref<32x32xbf16, #tpu.memory_space<vmem>>, %arg16: memref<1x32xf32, #tpu.memory_space<vmem>>, %arg17: memref<2x8x64xf32, #tpu.memory_space<vmem>>, %arg18: memref<2x2x8x32xf32, #tpu.memory_space<vmem>>, %arg19: memref<2x2x8x32xf32, #tpu.memory_space<vmem>>, %arg20: memref<2x8x32xf32, #tpu.memory_space<vmem>>, %arg21: memref<16x96xbf16, #tpu.memory_space<vmem>>) attributes {dimension_semantics = [#tpu.dimension_semantics<parallel>], iteration_bounds = array<i64: 1>, scalar_prefetch = 0 : i64, scratch_operands = 1 : i64, tpu.core_type = #tpu.core_type<tc>, window_params = [{transform_indices = @transform_0, window_bounds = array<i64: 2, 8, 16>}, {transform_indices = @transform_1, window_bounds = array<i64: 2, 8, 32>}, {transform_indices = @transform_2, window_bounds = array<i64: 2, 8, 8>}, {pipeline_mode = #tpu.pipeline_mode<synchronous>, transform_indices = @transform_3, window_bounds = array<i64: 1, 8, 8>}, {pipeline_mode = #tpu.pipeline_mode<synchronous>, transform_indices = @transform_4, window_bounds = array<i64: 16, 32>}, {pipeline_mode = #tpu.pipeline_mode<synchronous>, transform_indices = @transform_5, window_bounds = array<i64: 1, 32>}, {pipeline_mode = #tpu.pipeline_mode<synchronous>, transform_indices = @transform_6, window_bounds = array<i64: 96, 32>}, {pipeline_mode = #tpu.pipeline_mode<synchronous>, transform_indices = @transform_7, window_bounds = array<i64: 1, 32>}, {pipeline_mode = #tpu.pipeline_mode<synchronous>, transform_indices = @transform_8, window_bounds = array<i64: 96, 32>}, {pipeline_mode = #tpu.pipeline_mode<synchronous>, transform_indices = @transform_9, window_bounds = array<i64: 1, 32>}, {pipeline_mode = #tpu.pipeline_mode<synchronous>, transform_indices = @transform_10, window_bounds = array<i64: 32, 32>}, {pipeline_mode = #tpu.pipeline_mode<synchronous>, transform_indices = @transform_11, window_bounds = array<i64: 1, 32>}, {pipeline_mode = #tpu.pipeline_mode<synchronous>, transform_indices = @transform_12, window_bounds = array<i64: 32, 32>}, {pipeline_mode = #tpu.pipeline_mode<synchronous>, transform_indices = @transform_13, window_bounds = array<i64: 1, 32>}, {pipeline_mode = #tpu.pipeline_mode<synchronous>, transform_indices = @transform_14, window_bounds = array<i64: 32, 32>}, {pipeline_mode = #tpu.pipeline_mode<synchronous>, transform_indices = @transform_15, window_bounds = array<i64: 1, 32>}, {transform_indices = @transform_16, window_bounds = array<i64: 2, 8, 64>}, {transform_indices = @transform_17, window_bounds = array<i64: 2, 2, 8, 32>}, {transform_indices = @transform_18, window_bounds = array<i64: 2, 2, 8, 32>}, {transform_indices = @transform_19, window_bounds = array<i64: 2, 8, 32>}]} {
    %c0 = arith.constant 0 : index
    %c0_0 = arith.constant 0 : index
    %c0_1 = arith.constant 0 : index
    %0 = vector.load %arg1[%c0, %c0_0, %c0_1] : memref<2x8x16xbf16, #tpu.memory_space<vmem>>, vector<2x8x16xbf16>
    %1 = vector.shape_cast %0 : vector<2x8x16xbf16> to vector<16x16xbf16>
    %c0_2 = arith.constant 0 : index
    %c0_3 = arith.constant 0 : index
    %2 = vector.load %arg5[%c0_2, %c0_3] : memref<16x32xbf16, #tpu.memory_space<vmem>>, vector<16x32xbf16>
    %cst = arith.constant dense<0.000000e+00> : vector<16x32xf32>
    %3 = tpu.matmul %1, %2, %cst {dimension_numbers = #tpu.dot_dimension_numbers<[1], [0], [0], [1], [0, 0, 1, 1], [], []>} : vector<16x16xbf16>, vector<16x32xbf16>, vector<16x32xf32> -> vector<16x32xf32>
    %c0_4 = arith.constant 0 : index
    %c0_5 = arith.constant 0 : index
    %4 = vector.load %arg6[%c0_4, %c0_5] : memref<1x32xf32, #tpu.memory_space<vmem>>, vector<1x32xf32>
    %5 = vector.broadcast %4 : vector<1x32xf32> to vector<16x32xf32>
    %6 = arith.addf %3, %5 : vector<16x32xf32>
    %7 = arith.negf %6 : vector<16x32xf32>
    %8 = math.exp %7 : vector<16x32xf32>
    %cst_6 = arith.constant 1.000000e+00 : f32
    %9 = vector.broadcast %cst_6 : f32 to vector<16x32xf32>
    %10 = arith.addf %9, %8 : vector<16x32xf32>
    %11 = arith.divf %9, %10 : vector<16x32xf32>
    %c0_7 = arith.constant 0 : index
    %c0_8 = arith.constant 0 : index
    %c0_9 = arith.constant 0 : index
    %12 = vector.load %arg2[%c0_7, %c0_8, %c0_9] : memref<2x8x32xf32, #tpu.memory_space<vmem>>, vector<2x8x32xf32>
    %13 = vector.shape_cast %12 : vector<2x8x32xf32> to vector<16x32xf32>
    %14 = arith.mulf %13, %11 : vector<16x32xf32>
    %15 = vector.shape_cast %14 : vector<16x32xf32> to vector<2x8x32xf32>
    %c0_10 = arith.constant 0 : index
    %c0_11 = arith.constant 0 : index
    %c0_12 = arith.constant 0 : index
    %16 = vector.load %arg3[%c0_10, %c0_11, %c0_12] : memref<2x8x8xbf16, #tpu.memory_space<vmem>>, vector<2x8x8xbf16>
    %17 = vector.shape_cast %15 : vector<2x8x32xf32> to vector<16x32xf32>
    %18 = arith.truncf %17 : vector<16x32xf32> to vector<16x32xbf16>
    %c0_13 = arith.constant 0 : index
    %c0_14 = arith.constant 0 : index
    %19 = vector.load %arg21[%c0_13, %c0_14] : memref<16x96xbf16, #tpu.memory_space<vmem>>, vector<16x32xbf16>
    tpu.vector_store %arg21[%c0_13, %c0_14], %18 {strides = array<i32>} : memref<16x96xbf16, #tpu.memory_space<vmem>>, vector<16x32xbf16>,
    %20 = arith.truncf %15 : vector<2x8x32xf32> to vector<2x8x32xbf16>
    "tpu.trace_start"() <{level = 10 : i32, message = "bvw,bwc->bvc"}> : () -> ()
    %cst_15 = arith.constant dense<0.000000e+00> : vector<2x8x32xf32>
    %21 = tpu.matmul %16, %20, %cst_15 {dimension_numbers = #tpu.dot_dimension_numbers<[2], [1], [1], [2], [0, 0, 0, 1, 1, 2], [0], [0]>} : vector<2x8x8xbf16>, vector<2x8x32xbf16>, vector<2x8x32xf32> -> vector<2x8x32xf32>
    "tpu.trace_stop"() : () -> ()
    %cst_16 = arith.constant 5.000000e-02 : f32
    %22 = vector.broadcast %cst_16 : f32 to vector<2x8x32xf32>
    %23 = arith.mulf %22, %15 : vector<2x8x32xf32>
    %cst_17 = arith.constant 0.949999988 : f32
    %24 = vector.broadcast %cst_17 : f32 to vector<2x8x32xf32>
    %25 = arith.mulf %24, %21 : vector<2x8x32xf32>
    %26 = arith.addf %23, %25 : vector<2x8x32xf32>
    %c0_18 = arith.constant 0 : index
    %c0_19 = arith.constant 0 : index
    %c0_20 = arith.constant 0 : index
    %c0_21 = arith.constant 0 : index
    %27 = vector.load %arg18[%c0_18, %c0_19, %c0_20, %c0_21] : memref<2x2x8x32xf32, #tpu.memory_space<vmem>>, vector<1x2x8x32xf32>
    %28 = vector.shape_cast %27 : vector<1x2x8x32xf32> to vector<2x8x32xf32>
    %29 = vector.shape_cast %26 : vector<2x8x32xf32> to vector<1x2x8x32xf32>
    tpu.vector_store %arg18[%c0_18, %c0_19, %c0_20, %c0_21], %29 {strides = array<i32>} : memref<2x2x8x32xf32, #tpu.memory_space<vmem>>, vector<1x2x8x32xf32>,
    %30 = vector.shape_cast %26 : vector<2x8x32xf32> to vector<16x32xf32>
    %31 = arith.truncf %30 : vector<16x32xf32> to vector<16x32xbf16>
    %c0_22 = arith.constant 0 : index
    %c32 = arith.constant 32 : index
    %32 = vector.load %arg21[%c0_22, %c32] : memref<16x96xbf16, #tpu.memory_space<vmem>>, vector<16x32xbf16>
    tpu.vector_store %arg21[%c0_22, %c32], %31 {strides = array<i32>} : memref<16x96xbf16, #tpu.memory_space<vmem>>, vector<16x32xbf16>,
    %33 = arith.truncf %26 : vector<2x8x32xf32> to vector<2x8x32xbf16>
    "tpu.trace_start"() <{level = 10 : i32, message = "bvw,bwc->bvc"}> : () -> ()
    %cst_23 = arith.constant dense<0.000000e+00> : vector<2x8x32xf32>
    %34 = tpu.matmul %16, %33, %cst_23 {dimension_numbers = #tpu.dot_dimension_numbers<[2], [1], [1], [2], [0, 0, 0, 1, 1, 2], [0], [0]>} : vector<2x8x8xbf16>, vector<2x8x32xbf16>, vector<2x8x32xf32> -> vector<2x8x32xf32>
    "tpu.trace_stop"() : () -> ()
    %cst_24 = arith.constant 5.000000e-02 : f32
    %35 = vector.broadcast %cst_24 : f32 to vector<2x8x32xf32>
    %36 = arith.mulf %35, %15 : vector<2x8x32xf32>
    %cst_25 = arith.constant 0.949999988 : f32
    %37 = vector.broadcast %cst_25 : f32 to vector<2x8x32xf32>
    %38 = arith.mulf %37, %34 : vector<2x8x32xf32>
    %39 = arith.addf %36, %38 : vector<2x8x32xf32>
    %c1 = arith.constant 1 : index
    %c0_26 = arith.constant 0 : index
    %c0_27 = arith.constant 0 : index
    %c0_28 = arith.constant 0 : index
    %40 = vector.load %arg18[%c1, %c0_26, %c0_27, %c0_28] : memref<2x2x8x32xf32, #tpu.memory_space<vmem>>, vector<1x2x8x32xf32>
    %41 = vector.shape_cast %40 : vector<1x2x8x32xf32> to vector<2x8x32xf32>
    %42 = vector.shape_cast %39 : vector<2x8x32xf32> to vector<1x2x8x32xf32>
    tpu.vector_store %arg18[%c1, %c0_26, %c0_27, %c0_28], %42 {strides = array<i32>} : memref<2x2x8x32xf32, #tpu.memory_space<vmem>>, vector<1x2x8x32xf32>,
    %43 = vector.shape_cast %39 : vector<2x8x32xf32> to vector<16x32xf32>
    %44 = arith.truncf %43 : vector<16x32xf32> to vector<16x32xbf16>
    %c0_29 = arith.constant 0 : index
    %c64 = arith.constant 64 : index
    %45 = vector.load %arg21[%c0_29, %c64] : memref<16x96xbf16, #tpu.memory_space<vmem>>, vector<16x32xbf16>
    tpu.vector_store %arg21[%c0_29, %c64], %44 {strides = array<i32>} : memref<16x96xbf16, #tpu.memory_space<vmem>>, vector<16x32xbf16>,
    %c0_30 = arith.constant 0 : index
    %c0_31 = arith.constant 0 : index
    %46 = vector.load %arg21[%c0_30, %c0_31] : memref<16x96xbf16, #tpu.memory_space<vmem>>, vector<16x96xbf16>
    %c0_32 = arith.constant 0 : index
    %c0_33 = arith.constant 0 : index
    %47 = vector.load %arg7[%c0_32, %c0_33] : memref<96x32xbf16, #tpu.memory_space<vmem>>, vector<96x32xbf16>
    %cst_34 = arith.constant dense<0.000000e+00> : vector<16x32xf32>
    %48 = tpu.matmul %46, %47, %cst_34 {dimension_numbers = #tpu.dot_dimension_numbers<[1], [0], [0], [1], [0, 0, 1, 1], [], []>} : vector<16x96xbf16>, vector<96x32xbf16>, vector<16x32xf32> -> vector<16x32xf32>
    %c0_35 = arith.constant 0 : index
    %c0_36 = arith.constant 0 : index
    %49 = vector.load %arg8[%c0_35, %c0_36] : memref<1x32xf32, #tpu.memory_space<vmem>>, vector<1x32xf32>
    %50 = vector.broadcast %49 : vector<1x32xf32> to vector<16x32xf32>
    %51 = arith.addf %48, %50 : vector<16x32xf32>
    %52 = vector.shape_cast %51 : vector<16x32xf32> to vector<2x8x32xf32>
    %c0_37 = arith.constant 0 : index
    %c0_38 = arith.constant 0 : index
    %c0_39 = arith.constant 0 : index
    %53 = vector.load %arg17[%c0_37, %c0_38, %c0_39] : memref<2x8x64xf32, #tpu.memory_space<vmem>>, vector<2x8x32xf32>
    tpu.vector_store %arg17[%c0_37, %c0_38, %c0_39], %52 {strides = array<i32>} : memref<2x8x64xf32, #tpu.memory_space<vmem>>, vector<2x8x32xf32>,
    %54 = arith.truncf %51 : vector<16x32xf32> to vector<16x32xbf16>
    %c0_40 = arith.constant 0 : index
    %c0_41 = arith.constant 0 : index
    %55 = vector.load %arg11[%c0_40, %c0_41] : memref<32x32xbf16, #tpu.memory_space<vmem>>, vector<32x32xbf16>
    %cst_42 = arith.constant dense<0.000000e+00> : vector<16x32xf32>
    %56 = tpu.matmul %54, %55, %cst_42 {dimension_numbers = #tpu.dot_dimension_numbers<[1], [0], [0], [1], [0, 0, 1, 1], [], []>} : vector<16x32xbf16>, vector<32x32xbf16>, vector<16x32xf32> -> vector<16x32xf32>
    %c0_43 = arith.constant 0 : index
    %c0_44 = arith.constant 0 : index
    %57 = vector.load %arg12[%c0_43, %c0_44] : memref<1x32xf32, #tpu.memory_space<vmem>>, vector<1x32xf32>
    %58 = vector.broadcast %57 : vector<1x32xf32> to vector<16x32xf32>
    %59 = arith.addf %56, %58 : vector<16x32xf32>
    %cst_45 = arith.constant 0.000000e+00 : f32
    %60 = vector.broadcast %cst_45 : f32 to vector<16x32xf32>
    %61 = arith.maximumf %59, %60 : vector<16x32xf32>
    %62 = arith.subf %14, %61 : vector<16x32xf32>
    %63 = vector.shape_cast %62 : vector<16x32xf32> to vector<2x8x32xf32>
    %c0_46 = arith.constant 0 : index
    %c0_47 = arith.constant 0 : index
    %c0_48 = arith.constant 0 : index
    %64 = vector.load %arg4[%c0_46, %c0_47, %c0_48] : memref<1x8x8xbf16, #tpu.memory_space<vmem>>, vector<1x8x8xbf16>
    %65 = vector.shape_cast %64 : vector<1x8x8xbf16> to vector<8x8xbf16>
    %66 = vector.shape_cast %63 : vector<2x8x32xf32> to vector<16x32xf32>
    %67 = arith.truncf %66 : vector<16x32xf32> to vector<16x32xbf16>
    %c0_49 = arith.constant 0 : index
    %c0_50 = arith.constant 0 : index
    %68 = vector.load %arg21[%c0_49, %c0_50] : memref<16x96xbf16, #tpu.memory_space<vmem>>, vector<16x32xbf16>
    tpu.vector_store %arg21[%c0_49, %c0_50], %67 {strides = array<i32>} : memref<16x96xbf16, #tpu.memory_space<vmem>>, vector<16x32xbf16>,
    %69 = vector.extract_strided_slice %63 {offsets = [0, 0, 0], sizes = [1, 8, 32], strides = [1, 1, 1]} : vector<2x8x32xf32> to vector<1x8x32xf32>
    %70 = vector.shape_cast %69 : vector<1x8x32xf32> to vector<8x32xf32>
    %71 = vector.extract_strided_slice %63 {offsets = [1, 0, 0], sizes = [1, 8, 32], strides = [1, 1, 1]} : vector<2x8x32xf32> to vector<1x8x32xf32>
    %72 = vector.shape_cast %71 : vector<1x8x32xf32> to vector<8x32xf32>
    %73 = tpu.concatenate %70, %72 in 1 : vector<8x32xf32>, vector<8x32xf32> -> vector<8x64xf32>
    %74 = arith.truncf %73 : vector<8x64xf32> to vector<8x64xbf16>
    %cst_51 = arith.constant dense<0.000000e+00> : vector<8x64xf32>
    %75 = tpu.matmul %65, %74, %cst_51 {dimension_numbers = #tpu.dot_dimension_numbers<[1], [0], [0], [1], [0, 0, 1, 1], [], []>} : vector<8x8xbf16>, vector<8x64xbf16>, vector<8x64xf32> -> vector<8x64xf32>
    %cst_52 = arith.constant 5.000000e-02 : f32
    %76 = vector.broadcast %cst_52 : f32 to vector<8x64xf32>
    %77 = arith.mulf %76, %73 : vector<8x64xf32>
    %cst_53 = arith.constant 0.949999988 : f32
    %78 = vector.broadcast %cst_53 : f32 to vector<8x64xf32>
    %79 = arith.mulf %78, %75 : vector<8x64xf32>
    %80 = arith.addf %77, %79 : vector<8x64xf32>
    %81 = vector.extract_strided_slice %80 {offsets = [0, 0], sizes = [8, 32], strides = [1, 1]} : vector<8x64xf32> to vector<8x32xf32>
    %c0_54 = arith.constant 0 : index
    %c0_55 = arith.constant 0 : index
    %c0_56 = arith.constant 0 : index
    %c0_57 = arith.constant 0 : index
    %82 = vector.load %arg19[%c0_54, %c0_55, %c0_56, %c0_57] : memref<2x2x8x32xf32, #tpu.memory_space<vmem>>, vector<1x1x8x32xf32>
    %83 = vector.shape_cast %82 : vector<1x1x8x32xf32> to vector<8x32xf32>
    %84 = vector.shape_cast %81 : vector<8x32xf32> to vector<1x1x8x32xf32>
    tpu.vector_store %arg19[%c0_54, %c0_55, %c0_56, %c0_57], %84 {strides = array<i32>} : memref<2x2x8x32xf32, #tpu.memory_space<vmem>>, vector<1x1x8x32xf32>,
    %85 = arith.truncf %81 : vector<8x32xf32> to vector<8x32xbf16>
    %c0_58 = arith.constant 0 : index
    %c32_59 = arith.constant 32 : index
    %86 = vector.load %arg21[%c0_58, %c32_59] : memref<16x96xbf16, #tpu.memory_space<vmem>>, vector<8x32xbf16>
    tpu.vector_store %arg21[%c0_58, %c32_59], %85 {strides = array<i32>} : memref<16x96xbf16, #tpu.memory_space<vmem>>, vector<8x32xbf16>,
    %87 = vector.extract_strided_slice %80 {offsets = [0, 32], sizes = [8, 32], strides = [1, 1]} : vector<8x64xf32> to vector<8x32xf32>
    %c0_60 = arith.constant 0 : index
    %c1_61 = arith.constant 1 : index
    %c0_62 = arith.constant 0 : index
    %c0_63 = arith.constant 0 : index
    %88 = vector.load %arg19[%c0_60, %c1_61, %c0_62, %c0_63] : memref<2x2x8x32xf32, #tpu.memory_space<vmem>>, vector<1x1x8x32xf32>
    %89 = vector.shape_cast %88 : vector<1x1x8x32xf32> to vector<8x32xf32>
    %90 = vector.shape_cast %87 : vector<8x32xf32> to vector<1x1x8x32xf32>
    tpu.vector_store %arg19[%c0_60, %c1_61, %c0_62, %c0_63], %90 {strides = array<i32>} : memref<2x2x8x32xf32, #tpu.memory_space<vmem>>, vector<1x1x8x32xf32>,
    %91 = arith.truncf %87 : vector<8x32xf32> to vector<8x32xbf16>
    %c8 = arith.constant 8 : index
    %c32_64 = arith.constant 32 : index
    %92 = vector.load %arg21[%c8, %c32_64] : memref<16x96xbf16, #tpu.memory_space<vmem>>, vector<8x32xbf16>
    tpu.vector_store %arg21[%c8, %c32_64], %91 {strides = array<i32>} : memref<16x96xbf16, #tpu.memory_space<vmem>>, vector<8x32xbf16>,
    %93 = arith.truncf %80 : vector<8x64xf32> to vector<8x64xbf16>
    %cst_65 = arith.constant dense<0.000000e+00> : vector<8x64xf32>
    %94 = tpu.matmul %65, %93, %cst_65 {dimension_numbers = #tpu.dot_dimension_numbers<[1], [0], [0], [1], [0, 0, 1, 1], [], []>} : vector<8x8xbf16>, vector<8x64xbf16>, vector<8x64xf32> -> vector<8x64xf32>
    %cst_66 = arith.constant 5.000000e-02 : f32
    %95 = vector.broadcast %cst_66 : f32 to vector<8x64xf32>
    %96 = arith.mulf %95, %73 : vector<8x64xf32>
    %cst_67 = arith.constant 0.949999988 : f32
    %97 = vector.broadcast %cst_67 : f32 to vector<8x64xf32>
    %98 = arith.mulf %97, %94 : vector<8x64xf32>
    %99 = arith.addf %96, %98 : vector<8x64xf32>
    %100 = vector.extract_strided_slice %99 {offsets = [0, 0], sizes = [8, 32], strides = [1, 1]} : vector<8x64xf32> to vector<8x32xf32>
    %c1_68 = arith.constant 1 : index
    %c0_69 = arith.constant 0 : index
    %c0_70 = arith.constant 0 : index
    %c0_71 = arith.constant 0 : index
    %101 = vector.load %arg19[%c1_68, %c0_69, %c0_70, %c0_71] : memref<2x2x8x32xf32, #tpu.memory_space<vmem>>, vector<1x1x8x32xf32>
    %102 = vector.shape_cast %101 : vector<1x1x8x32xf32> to vector<8x32xf32>
    %103 = vector.shape_cast %100 : vector<8x32xf32> to vector<1x1x8x32xf32>
    tpu.vector_store %arg19[%c1_68, %c0_69, %c0_70, %c0_71], %103 {strides = array<i32>} : memref<2x2x8x32xf32, #tpu.memory_space<vmem>>, vector<1x1x8x32xf32>,
    %104 = arith.truncf %100 : vector<8x32xf32> to vector<8x32xbf16>
    %c0_72 = arith.constant 0 : index
    %c64_73 = arith.constant 64 : index
    %105 = vector.load %arg21[%c0_72, %c64_73] : memref<16x96xbf16, #tpu.memory_space<vmem>>, vector<8x32xbf16>
    tpu.vector_store %arg21[%c0_72, %c64_73], %104 {strides = array<i32>} : memref<16x96xbf16, #tpu.memory_space<vmem>>, vector<8x32xbf16>,
    %106 = vector.extract_strided_slice %99 {offsets = [0, 32], sizes = [8, 32], strides = [1, 1]} : vector<8x64xf32> to vector<8x32xf32>
    %c1_74 = arith.constant 1 : index
    %c1_75 = arith.constant 1 : index
    %c0_76 = arith.constant 0 : index
    %c0_77 = arith.constant 0 : index
    %107 = vector.load %arg19[%c1_74, %c1_75, %c0_76, %c0_77] : memref<2x2x8x32xf32, #tpu.memory_space<vmem>>, vector<1x1x8x32xf32>
    %108 = vector.shape_cast %107 : vector<1x1x8x32xf32> to vector<8x32xf32>
    %109 = vector.shape_cast %106 : vector<8x32xf32> to vector<1x1x8x32xf32>
    tpu.vector_store %arg19[%c1_74, %c1_75, %c0_76, %c0_77], %109 {strides = array<i32>} : memref<2x2x8x32xf32, #tpu.memory_space<vmem>>, vector<1x1x8x32xf32>,
    %110 = arith.truncf %106 : vector<8x32xf32> to vector<8x32xbf16>
    %c8_78 = arith.constant 8 : index
    %c64_79 = arith.constant 64 : index
    %111 = vector.load %arg21[%c8_78, %c64_79] : memref<16x96xbf16, #tpu.memory_space<vmem>>, vector<8x32xbf16>
    tpu.vector_store %arg21[%c8_78, %c64_79], %110 {strides = array<i32>} : memref<16x96xbf16, #tpu.memory_space<vmem>>, vector<8x32xbf16>,
    %c0_80 = arith.constant 0 : index
    %c0_81 = arith.constant 0 : index
    %112 = vector.load %arg21[%c0_80, %c0_81] : memref<16x96xbf16, #tpu.memory_space<vmem>>, vector<16x96xbf16>
    %c0_82 = arith.constant 0 : index
    %c0_83 = arith.constant 0 : index
    %113 = vector.load %arg9[%c0_82, %c0_83] : memref<96x32xbf16, #tpu.memory_space<vmem>>, vector<96x32xbf16>
    %cst_84 = arith.constant dense<0.000000e+00> : vector<16x32xf32>
    %114 = tpu.matmul %112, %113, %cst_84 {dimension_numbers = #tpu.dot_dimension_numbers<[1], [0], [0], [1], [0, 0, 1, 1], [], []>} : vector<16x96xbf16>, vector<96x32xbf16>, vector<16x32xf32> -> vector<16x32xf32>
    %c0_85 = arith.constant 0 : index
    %c0_86 = arith.constant 0 : index
    %115 = vector.load %arg10[%c0_85, %c0_86] : memref<1x32xf32, #tpu.memory_space<vmem>>, vector<1x32xf32>
    %116 = vector.broadcast %115 : vector<1x32xf32> to vector<16x32xf32>
    %117 = arith.addf %114, %116 : vector<16x32xf32>
    %118 = vector.shape_cast %117 : vector<16x32xf32> to vector<2x8x32xf32>
    %c0_87 = arith.constant 0 : index
    %c0_88 = arith.constant 0 : index
    %c32_89 = arith.constant 32 : index
    %119 = vector.load %arg17[%c0_87, %c0_88, %c32_89] : memref<2x8x64xf32, #tpu.memory_space<vmem>>, vector<2x8x32xf32>
    tpu.vector_store %arg17[%c0_87, %c0_88, %c32_89], %118 {strides = array<i32>} : memref<2x8x64xf32, #tpu.memory_space<vmem>>, vector<2x8x32xf32>,
    %120 = arith.truncf %117 : vector<16x32xf32> to vector<16x32xbf16>
    %c0_90 = arith.constant 0 : index
    %c0_91 = arith.constant 0 : index
    %121 = vector.load %arg13[%c0_90, %c0_91] : memref<32x32xbf16, #tpu.memory_space<vmem>>, vector<32x32xbf16>
    %cst_92 = arith.constant dense<0.000000e+00> : vector<16x32xf32>
    %122 = tpu.matmul %120, %121, %cst_92 {dimension_numbers = #tpu.dot_dimension_numbers<[1], [0], [0], [1], [0, 0, 1, 1], [], []>} : vector<16x32xbf16>, vector<32x32xbf16>, vector<16x32xf32> -> vector<16x32xf32>
    %c0_93 = arith.constant 0 : index
    %c0_94 = arith.constant 0 : index
    %123 = vector.load %arg14[%c0_93, %c0_94] : memref<1x32xf32, #tpu.memory_space<vmem>>, vector<1x32xf32>
    %124 = vector.broadcast %123 : vector<1x32xf32> to vector<16x32xf32>
    %125 = arith.addf %122, %124 : vector<16x32xf32>
    %cst_95 = arith.constant 0.000000e+00 : f32
    %126 = vector.broadcast %cst_95 : f32 to vector<16x32xf32>
    %127 = arith.maximumf %125, %126 : vector<16x32xf32>
    %128 = arith.subf %62, %127 : vector<16x32xf32>
    %129 = arith.truncf %128 : vector<16x32xf32> to vector<16x32xbf16>
    %c0_96 = arith.constant 0 : index
    %c0_97 = arith.constant 0 : index
    %130 = vector.load %arg15[%c0_96, %c0_97] : memref<32x32xbf16, #tpu.memory_space<vmem>>, vector<32x32xbf16>
    %cst_98 = arith.constant dense<0.000000e+00> : vector<16x32xf32>
    %131 = tpu.matmul %129, %130, %cst_98 {dimension_numbers = #tpu.dot_dimension_numbers<[1], [0], [0], [1], [0, 0, 1, 1], [], []>} : vector<16x32xbf16>, vector<32x32xbf16>, vector<16x32xf32> -> vector<16x32xf32>
    %c0_99 = arith.constant 0 : index
    %c0_100 = arith.constant 0 : index
    %132 = vector.load %arg16[%c0_99, %c0_100] : memref<1x32xf32, #tpu.memory_space<vmem>>, vector<1x32xf32>
    %133 = vector.broadcast %132 : vector<1x32xf32> to vector<16x32xf32>
    %134 = arith.addf %131, %133 : vector<16x32xf32>
    %cst_101 = arith.constant 0.000000e+00 : f32
    %135 = vector.broadcast %cst_101 : f32 to vector<16x32xf32>
    %136 = arith.maximumf %134, %135 : vector<16x32xf32>
    %137 = arith.subf %13, %136 : vector<16x32xf32>
    %138 = vector.shape_cast %137 : vector<16x32xf32> to vector<2x8x32xf32>
    %c0_102 = arith.constant 0 : index
    %c0_103 = arith.constant 0 : index
    %c0_104 = arith.constant 0 : index
    %139 = vector.load %arg20[%c0_102, %c0_103, %c0_104] : memref<2x8x32xf32, #tpu.memory_space<vmem>>, vector<2x8x32xf32>
    tpu.vector_store %arg20[%c0_102, %c0_103, %c0_104], %138 {strides = array<i32>} : memref<2x8x32xf32, #tpu.memory_space<vmem>>, vector<2x8x32xf32>,
    return
  }
  func.func @transform_0(%arg0: i32) -> (i32, i32, i32) {
    %c0_i32 = arith.constant 0 : i32
    %c0_i32_0 = arith.constant 0 : i32
    %c0_i32_1 = arith.constant 0 : i32
    return %arg0, %c0_i32, %c0_i32_0 : i32, i32, i32
  }
  func.func @transform_1(%arg0: i32) -> (i32, i32, i32) {
    %c0_i32 = arith.constant 0 : i32
    %c0_i32_0 = arith.constant 0 : i32
    %c0_i32_1 = arith.constant 0 : i32
    return %arg0, %c0_i32, %c0_i32_0 : i32, i32, i32
  }
  func.func @transform_2(%arg0: i32) -> (i32, i32, i32) {
    %c0_i32 = arith.constant 0 : i32
    %c0_i32_0 = arith.constant 0 : i32
    %c0_i32_1 = arith.constant 0 : i32
    return %arg0, %c0_i32, %c0_i32_0 : i32, i32, i32
  }
  func.func @transform_3(%arg0: i32) -> (i32, i32, i32) {
    %c0_i32 = arith.constant 0 : i32
    %c0_i32_0 = arith.constant 0 : i32
    %c0_i32_1 = arith.constant 0 : i32
    %c0_i32_2 = arith.constant 0 : i32
    return %c0_i32, %c0_i32_0, %c0_i32_1 : i32, i32, i32
  }
  func.func @transform_4(%arg0: i32) -> (i32, i32) {
    %c0_i32 = arith.constant 0 : i32
    %c0_i32_0 = arith.constant 0 : i32
    %c0_i32_1 = arith.constant 0 : i32
    return %c0_i32, %c0_i32_0 : i32, i32
  }
  func.func @transform_5(%arg0: i32) -> (i32, i32) {
    %c0_i32 = arith.constant 0 : i32
    %c0_i32_0 = arith.constant 0 : i32
    %c0_i32_1 = arith.constant 0 : i32
    return %c0_i32, %c0_i32_0 : i32, i32
  }
  func.func @transform_6(%arg0: i32) -> (i32, i32) {
    %c0_i32 = arith.constant 0 : i32
    %c0_i32_0 = arith.constant 0 : i32
    %c0_i32_1 = arith.constant 0 : i32
    return %c0_i32, %c0_i32_0 : i32, i32
  }
  func.func @transform_7(%arg0: i32) -> (i32, i32) {
    %c0_i32 = arith.constant 0 : i32
    %c0_i32_0 = arith.constant 0 : i32
    %c0_i32_1 = arith.constant 0 : i32
    return %c0_i32, %c0_i32_0 : i32, i32
  }
  func.func @transform_8(%arg0: i32) -> (i32, i32) {
    %c0_i32 = arith.constant 0 : i32
    %c0_i32_0 = arith.constant 0 : i32
    %c0_i32_1 = arith.constant 0 : i32
    return %c0_i32, %c0_i32_0 : i32, i32
  }
  func.func @transform_9(%arg0: i32) -> (i32, i32) {
    %c0_i32 = arith.constant 0 : i32
    %c0_i32_0 = arith.constant 0 : i32
    %c0_i32_1 = arith.constant 0 : i32
    return %c0_i32, %c0_i32_0 : i32, i32
  }
  func.func @transform_10(%arg0: i32) -> (i32, i32) {
    %c0_i32 = arith.constant 0 : i32
    %c0_i32_0 = arith.constant 0 : i32
    %c0_i32_1 = arith.constant 0 : i32
    return %c0_i32, %c0_i32_0 : i32, i32
  }
  func.func @transform_11(%arg0: i32) -> (i32, i32) {
    %c0_i32 = arith.constant 0 : i32
    %c0_i32_0 = arith.constant 0 : i32
    %c0_i32_1 = arith.constant 0 : i32
    return %c0_i32, %c0_i32_0 : i32, i32
  }
  func.func @transform_12(%arg0: i32) -> (i32, i32) {
    %c0_i32 = arith.constant 0 : i32
    %c0_i32_0 = arith.constant 0 : i32
    %c0_i32_1 = arith.constant 0 : i32
    return %c0_i32, %c0_i32_0 : i32, i32
  }
  func.func @transform_13(%arg0: i32) -> (i32, i32) {
    %c0_i32 = arith.constant 0 : i32
    %c0_i32_0 = arith.constant 0 : i32
    %c0_i32_1 = arith.constant 0 : i32
    return %c0_i32, %c0_i32_0 : i32, i32
  }
  func.func @transform_14(%arg0: i32) -> (i32, i32) {
    %c0_i32 = arith.constant 0 : i32
    %c0_i32_0 = arith.constant 0 : i32
    %c0_i32_1 = arith.constant 0 : i32
    return %c0_i32, %c0_i32_0 : i32, i32
  }
  func.func @transform_15(%arg0: i32) -> (i32, i32) {
    %c0_i32 = arith.constant 0 : i32
    %c0_i32_0 = arith.constant 0 : i32
    %c0_i32_1 = arith.constant 0 : i32
    return %c0_i32, %c0_i32_0 : i32, i32
  }
  func.func @transform_16(%arg0: i32) -> (i32, i32, i32) {
    %c0_i32 = arith.constant 0 : i32
    %c0_i32_0 = arith.constant 0 : i32
    %c0_i32_1 = arith.constant 0 : i32
    return %arg0, %c0_i32, %c0_i32_0 : i32, i32, i32
  }
  func.func @transform_17(%arg0: i32) -> (i32, i32, i32, i32) {
    %c0_i32 = arith.constant 0 : i32
    %c0_i32_0 = arith.constant 0 : i32
    %c0_i32_1 = arith.constant 0 : i32
    %c0_i32_2 = arith.constant 0 : i32
    return %c0_i32, %arg0, %c0_i32_0, %c0_i32_1 : i32, i32, i32, i32
  }
  func.func @transform_18(%arg0: i32) -> (i32, i32, i32, i32) {
    %c0_i32 = arith.constant 0 : i32
    %c0_i32_0 = arith.constant 0 : i32
    %c0_i32_1 = arith.constant 0 : i32
    %c0_i32_2 = arith.constant 0 : i32
    return %c0_i32, %arg0, %c0_i32_0, %c0_i32_1 : i32, i32, i32, i32
  }
  func.func @transform_19(%arg0: i32) -> (i32, i32, i32) {
    %c0_i32 = arith.constant 0 : i32
    %c0_i32_0 = arith.constant 0 : i32
    %c0_i32_1 = arith.constant 0 : i32
    return %arg0, %c0_i32, %c0_i32_0 : i32, i32, i32
  }
}

module attributes {stable_mosaic.version = 11 : i64} {
  func.func @_hardpurg_kernel(%arg0: i32, %arg1: memref<2x8x16xbf16, #tpu.memory_space<vmem>>, %arg2: memref<2x8x32xf32, #tpu.memory_space<vmem>>, %arg3: memref<2x8x8xbf16, #tpu.memory_space<vmem>>, %arg4: memref<1x8x8xbf16, #tpu.memory_space<vmem>>, %arg5: memref<16x32xbf16, #tpu.memory_space<vmem>>, %arg6: memref<1x32xf32, #tpu.memory_space<vmem>>, %arg7: memref<96x32xbf16, #tpu.memory_space<vmem>>, %arg8: memref<1x32xf32, #tpu.memory_space<vmem>>, %arg9: memref<96x32xbf16, #tpu.memory_space<vmem>>, %arg10: memref<1x32xf32, #tpu.memory_space<vmem>>, %arg11: memref<32x32xbf16, #tpu.memory_space<vmem>>, %arg12: memref<1x32xf32, #tpu.memory_space<vmem>>, %arg13: memref<32x32xbf16, #tpu.memory_space<vmem>>, %arg14: memref<1x32xf32, #tpu.memory_space<vmem>>, %arg15: memref<32x32xbf16, #tpu.memory_space<vmem>>, %arg16: memref<1x32xf32, #tpu.memory_space<vmem>>, %arg17: memref<2x8x64xf32, #tpu.memory_space<vmem>>, %arg18: memref<2x2x8x32xf32, #tpu.memory_space<vmem>>, %arg19: memref<2x2x8x32xf32, #tpu.memory_space<vmem>>, %arg20: memref<2x8x32xf32, #tpu.memory_space<vmem>>, %arg21: memref<16x96xbf16, #tpu.memory_space<vmem>>) attributes {dimension_semantics = [#tpu.dimension_semantics<parallel>], iteration_bounds = array<i64: 1>, scalar_prefetch = 0 : i64, scratch_operands = 1 : i64, tpu.core_type = #tpu.core_type<tc>, window_params = [{transform_indices = @transform_0, window_bounds = array<i64: 2, 8, 16>}, {transform_indices = @transform_1, window_bounds = array<i64: 2, 8, 32>}, {transform_indices = @transform_2, window_bounds = array<i64: 2, 8, 8>}, {pipeline_mode = #tpu.pipeline_mode<synchronous>, transform_indices = @transform_3, window_bounds = array<i64: 1, 8, 8>}, {pipeline_mode = #tpu.pipeline_mode<synchronous>, transform_indices = @transform_4, window_bounds = array<i64: 16, 32>}, {pipeline_mode = #tpu.pipeline_mode<synchronous>, transform_indices = @transform_5, window_bounds = array<i64: 1, 32>}, {pipeline_mode = #tpu.pipeline_mode<synchronous>, transform_indices = @transform_6, window_bounds = array<i64: 96, 32>}, {pipeline_mode = #tpu.pipeline_mode<synchronous>, transform_indices = @transform_7, window_bounds = array<i64: 1, 32>}, {pipeline_mode = #tpu.pipeline_mode<synchronous>, transform_indices = @transform_8, window_bounds = array<i64: 96, 32>}, {pipeline_mode = #tpu.pipeline_mode<synchronous>, transform_indices = @transform_9, window_bounds = array<i64: 1, 32>}, {pipeline_mode = #tpu.pipeline_mode<synchronous>, transform_indices = @transform_10, window_bounds = array<i64: 32, 32>}, {pipeline_mode = #tpu.pipeline_mode<synchronous>, transform_indices = @transform_11, window_bounds = array<i64: 1, 32>}, {pipeline_mode = #tpu.pipeline_mode<synchronous>, transform_indices = @transform_12, window_bounds = array<i64: 32, 32>}, {pipeline_mode = #tpu.pipeline_mode<synchronous>, transform_indices = @transform_13, window_bounds = array<i64: 1, 32>}, {pipeline_mode = #tpu.pipeline_mode<synchronous>, transform_indices = @transform_14, window_bounds = array<i64: 32, 32>}, {pipeline_mode = #tpu.pipeline_mode<synchronous>, transform_indices = @transform_15, window_bounds = array<i64: 1, 32>}, {transform_indices = @transform_16, window_bounds = array<i64: 2, 8, 64>}, {transform_indices = @transform_17, window_bounds = array<i64: 2, 2, 8, 32>}, {transform_indices = @transform_18, window_bounds = array<i64: 2, 2, 8, 32>}, {transform_indices = @transform_19, window_bounds = array<i64: 2, 8, 32>}]} {
    %c0 = arith.constant 0 : index
    %c0_0 = arith.constant 0 : index
    %c0_1 = arith.constant 0 : index
    %0 = vector.load %arg1[%c0, %c0_0, %c0_1] : memref<2x8x16xbf16, #tpu.memory_space<vmem>>, vector<2x8x16xbf16>
    %1 = vector.shape_cast %0 : vector<2x8x16xbf16> to vector<16x16xbf16>
    %c0_2 = arith.constant 0 : index
    %c0_3 = arith.constant 0 : index
    %2 = vector.load %arg5[%c0_2, %c0_3] : memref<16x32xbf16, #tpu.memory_space<vmem>>, vector<16x32xbf16>
    %cst = arith.constant dense<0.000000e+00> : vector<16x32xf32>
    %3 = tpu.matmul %1, %2, %cst {dimension_numbers = #tpu.dot_dimension_numbers<[1], [0], [0], [1], [0, 0, 1, 1], [], []>} : vector<16x16xbf16>, vector<16x32xbf16>, vector<16x32xf32> -> vector<16x32xf32>
    %c0_4 = arith.constant 0 : index
    %c0_5 = arith.constant 0 : index
    %4 = vector.load %arg6[%c0_4, %c0_5] : memref<1x32xf32, #tpu.memory_space<vmem>>, vector<1x32xf32>
    %5 = vector.broadcast %4 : vector<1x32xf32> to vector<16x32xf32>
    %6 = arith.addf %3, %5 : vector<16x32xf32>
    %7 = arith.negf %6 : vector<16x32xf32>
    %8 = math.exp %7 : vector<16x32xf32>
    %cst_6 = arith.constant 1.000000e+00 : f32
    %9 = vector.broadcast %cst_6 : f32 to vector<16x32xf32>
    %10 = arith.addf %9, %8 : vector<16x32xf32>
    %11 = arith.divf %9, %10 : vector<16x32xf32>
    %c0_7 = arith.constant 0 : index
    %c0_8 = arith.constant 0 : index
    %c0_9 = arith.constant 0 : index
    %12 = vector.load %arg2[%c0_7, %c0_8, %c0_9] : memref<2x8x32xf32, #tpu.memory_space<vmem>>, vector<2x8x32xf32>
    %13 = vector.shape_cast %12 : vector<2x8x32xf32> to vector<16x32xf32>
    %14 = arith.mulf %13, %11 : vector<16x32xf32>
    %15 = vector.shape_cast %14 : vector<16x32xf32> to vector<2x8x32xf32>
    %c0_10 = arith.constant 0 : index
    %c0_11 = arith.constant 0 : index
    %c0_12 = arith.constant 0 : index
    %16 = vector.load %arg3[%c0_10, %c0_11, %c0_12] : memref<2x8x8xbf16, #tpu.memory_space<vmem>>, vector<2x8x8xbf16>
    %17 = vector.shape_cast %15 : vector<2x8x32xf32> to vector<16x32xf32>
    %18 = arith.truncf %17 : vector<16x32xf32> to vector<16x32xbf16>
    %c0_13 = arith.constant 0 : index
    %c0_14 = arith.constant 0 : index
    %19 = vector.load %arg21[%c0_13, %c0_14] : memref<16x96xbf16, #tpu.memory_space<vmem>>, vector<16x32xbf16>
    tpu.vector_store %arg21[%c0_13, %c0_14], %18 {strides = array<i32>} : memref<16x96xbf16, #tpu.memory_space<vmem>>, vector<16x32xbf16>,
    %20 = arith.truncf %15 : vector<2x8x32xf32> to vector<2x8x32xbf16>
    "tpu.trace_start"() <{level = 10 : i32, message = "bvw,bwc->bvc"}> : () -> ()
    %cst_15 = arith.constant dense<0.000000e+00> : vector<2x8x32xf32>
    %21 = tpu.matmul %16, %20, %cst_15 {dimension_numbers = #tpu.dot_dimension_numbers<[2], [1], [1], [2], [0, 0, 0, 1, 1, 2], [0], [0]>} : vector<2x8x8xbf16>, vector<2x8x32xbf16>, vector<2x8x32xf32> -> vector<2x8x32xf32>
    "tpu.trace_stop"() : () -> ()
    %cst_16 = arith.constant 5.000000e-02 : f32
    %22 = vector.broadcast %cst_16 : f32 to vector<2x8x32xf32>
    %23 = arith.mulf %22, %15 : vector<2x8x32xf32>
    %cst_17 = arith.constant 0.949999988 : f32
    %24 = vector.broadcast %cst_17 : f32 to vector<2x8x32xf32>
    %25 = arith.mulf %24, %21 : vector<2x8x32xf32>
    %26 = arith.addf %23, %25 : vector<2x8x32xf32>
    %c0_18 = arith.constant 0 : index
    %c0_19 = arith.constant 0 : index
    %c0_20 = arith.constant 0 : index
    %c0_21 = arith.constant 0 : index
    %27 = vector.load %arg18[%c0_18, %c0_19, %c0_20, %c0_21] : memref<2x2x8x32xf32, #tpu.memory_space<vmem>>, vector<1x2x8x32xf32>
    %28 = vector.shape_cast %27 : vector<1x2x8x32xf32> to vector<2x8x32xf32>
    %29 = vector.shape_cast %26 : vector<2x8x32xf32> to vector<1x2x8x32xf32>
    tpu.vector_store %arg18[%c0_18, %c0_19, %c0_20, %c0_21], %29 {strides = array<i32>} : memref<2x2x8x32xf32, #tpu.memory_space<vmem>>, vector<1x2x8x32xf32>,
    %30 = vector.shape_cast %26 : vector<2x8x32xf32> to vector<16x32xf32>
    %31 = arith.truncf %30 : vector<16x32xf32> to vector<16x32xbf16>
    %c0_22 = arith.constant 0 : index
    %c32 = arith.constant 32 : index
    %32 = vector.load %arg21[%c0_22, %c32] : memref<16x96xbf16, #tpu.memory_space<vmem>>, vector<16x32xbf16>
    tpu.vector_store %arg21[%c0_22, %c32], %31 {strides = array<i32>} : memref<16x96xbf16, #tpu.memory_space<vmem>>, vector<16x32xbf16>,
    %33 = arith.truncf %26 : vector<2x8x32xf32> to vector<2x8x32xbf16>
    "tpu.trace_start"() <{level = 10 : i32, message = "bvw,bwc->bvc"}> : () -> ()
    %cst_23 = arith.constant dense<0.000000e+00> : vector<2x8x32xf32>
    %34 = tpu.matmul %16, %33, %cst_23 {dimension_numbers = #tpu.dot_dimension_numbers<[2], [1], [1], [2], [0, 0, 0, 1, 1, 2], [0], [0]>} : vector<2x8x8xbf16>, vector<2x8x32xbf16>, vector<2x8x32xf32> -> vector<2x8x32xf32>
    "tpu.trace_stop"() : () -> ()
    %cst_24 = arith.constant 5.000000e-02 : f32
    %35 = vector.broadcast %cst_24 : f32 to vector<2x8x32xf32>
    %36 = arith.mulf %35, %15 : vector<2x8x32xf32>
    %cst_25 = arith.constant 0.949999988 : f32
    %37 = vector.broadcast %cst_25 : f32 to vector<2x8x32xf32>
    %38 = arith.mulf %37, %34 : vector<2x8x32xf32>
    %39 = arith.addf %36, %38 : vector<2x8x32xf32>
    %c1 = arith.constant 1 : index
    %c0_26 = arith.constant 0 : index
    %c0_27 = arith.constant 0 : index
    %c0_28 = arith.constant 0 : index
    %40 = vector.load %arg18[%c1, %c0_26, %c0_27, %c0_28] : memref<2x2x8x32xf32, #tpu.memory_space<vmem>>, vector<1x2x8x32xf32>
    %41 = vector.shape_cast %40 : vector<1x2x8x32xf32> to vector<2x8x32xf32>
    %42 = vector.shape_cast %39 : vector<2x8x32xf32> to vector<1x2x8x32xf32>
    tpu.vector_store %arg18[%c1, %c0_26, %c0_27, %c0_28], %42 {strides = array<i32>} : memref<2x2x8x32xf32, #tpu.memory_space<vmem>>, vector<1x2x8x32xf32>,
    %43 = vector.shape_cast %39 : vector<2x8x32xf32> to vector<16x32xf32>
    %44 = arith.truncf %43 : vector<16x32xf32> to vector<16x32xbf16>
    %c0_29 = arith.constant 0 : index
    %c64 = arith.constant 64 : index
    %45 = vector.load %arg21[%c0_29, %c64] : memref<16x96xbf16, #tpu.memory_space<vmem>>, vector<16x32xbf16>
    tpu.vector_store %arg21[%c0_29, %c64], %44 {strides = array<i32>} : memref<16x96xbf16, #tpu.memory_space<vmem>>, vector<16x32xbf16>,
    %c0_30 = arith.constant 0 : index
    %c0_31 = arith.constant 0 : index
    %46 = vector.load %arg21[%c0_30, %c0_31] : memref<16x96xbf16, #tpu.memory_space<vmem>>, vector<16x96xbf16>
    %c0_32 = arith.constant 0 : index
    %c0_33 = arith.constant 0 : index
    %47 = vector.load %arg7[%c0_32, %c0_33] : memref<96x32xbf16, #tpu.memory_space<vmem>>, vector<96x32xbf16>
    %cst_34 = arith.constant dense<0.000000e+00> : vector<16x32xf32>
    %48 = tpu.matmul %46, %47, %cst_34 {dimension_numbers = #tpu.dot_dimension_numbers<[1], [0], [0], [1], [0, 0, 1, 1], [], []>} : vector<16x96xbf16>, vector<96x32xbf16>, vector<16x32xf32> -> vector<16x32xf32>
    %c0_35 = arith.constant 0 : index
    %c0_36 = arith.constant 0 : index
    %49 = vector.load %arg8[%c0_35, %c0_36] : memref<1x32xf32, #tpu.memory_space<vmem>>, vector<1x32xf32>
    %50 = vector.broadcast %49 : vector<1x32xf32> to vector<16x32xf32>
    %51 = arith.addf %48, %50 : vector<16x32xf32>
    %52 = vector.shape_cast %51 : vector<16x32xf32> to vector<2x8x32xf32>
    %c0_37 = arith.constant 0 : index
    %c0_38 = arith.constant 0 : index
    %c0_39 = arith.constant 0 : index
    %53 = vector.load %arg17[%c0_37, %c0_38, %c0_39] : memref<2x8x64xf32, #tpu.memory_space<vmem>>, vector<2x8x32xf32>
    tpu.vector_store %arg17[%c0_37, %c0_38, %c0_39], %52 {strides = array<i32>} : memref<2x8x64xf32, #tpu.memory_space<vmem>>, vector<2x8x32xf32>,
    %54 = arith.truncf %51 : vector<16x32xf32> to vector<16x32xbf16>
    %c0_40 = arith.constant 0 : index
    %c0_41 = arith.constant 0 : index
    %55 = vector.load %arg11[%c0_40, %c0_41] : memref<32x32xbf16, #tpu.memory_space<vmem>>, vector<32x32xbf16>
    %cst_42 = arith.constant dense<0.000000e+00> : vector<16x32xf32>
    %56 = tpu.matmul %54, %55, %cst_42 {dimension_numbers = #tpu.dot_dimension_numbers<[1], [0], [0], [1], [0, 0, 1, 1], [], []>} : vector<16x32xbf16>, vector<32x32xbf16>, vector<16x32xf32> -> vector<16x32xf32>
    %c0_43 = arith.constant 0 : index
    %c0_44 = arith.constant 0 : index
    %57 = vector.load %arg12[%c0_43, %c0_44] : memref<1x32xf32, #tpu.memory_space<vmem>>, vector<1x32xf32>
    %58 = vector.broadcast %57 : vector<1x32xf32> to vector<16x32xf32>
    %59 = arith.addf %56, %58 : vector<16x32xf32>
    %cst_45 = arith.constant 0.000000e+00 : f32
    %60 = vector.broadcast %cst_45 : f32 to vector<16x32xf32>
    %61 = arith.maximumf %59, %60 : vector<16x32xf32>
    %62 = arith.subf %14, %61 : vector<16x32xf32>
    %63 = vector.shape_cast %62 : vector<16x32xf32> to vector<2x8x32xf32>
    %c0_46 = arith.constant 0 : index
    %c0_47 = arith.constant 0 : index
    %c0_48 = arith.constant 0 : index
    %64 = vector.load %arg4[%c0_46, %c0_47, %c0_48] : memref<1x8x8xbf16, #tpu.memory_space<vmem>>, vector<1x8x8xbf16>
    %65 = vector.shape_cast %64 : vector<1x8x8xbf16> to vector<8x8xbf16>
    %66 = vector.shape_cast %63 : vector<2x8x32xf32> to vector<16x32xf32>
    %67 = arith.truncf %66 : vector<16x32xf32> to vector<16x32xbf16>
    %c0_49 = arith.constant 0 : index
    %c0_50 = arith.constant 0 : index
    %68 = vector.load %arg21[%c0_49, %c0_50] : memref<16x96xbf16, #tpu.memory_space<vmem>>, vector<16x32xbf16>
    tpu.vector_store %arg21[%c0_49, %c0_50], %67 {strides = array<i32>} : memref<16x96xbf16, #tpu.memory_space<vmem>>, vector<16x32xbf16>,
    %69 = vector.extract_strided_slice %63 {offsets = [0, 0, 0], sizes = [1, 8, 32], strides = [1, 1, 1]} : vector<2x8x32xf32> to vector<1x8x32xf32>
    %70 = vector.shape_cast %69 : vector<1x8x32xf32> to vector<8x32xf32>
    %71 = vector.extract_strided_slice %63 {offsets = [1, 0, 0], sizes = [1, 8, 32], strides = [1, 1, 1]} : vector<2x8x32xf32> to vector<1x8x32xf32>
    %72 = vector.shape_cast %71 : vector<1x8x32xf32> to vector<8x32xf32>
    %73 = tpu.concatenate %70, %72 in 1 : vector<8x32xf32>, vector<8x32xf32> -> vector<8x64xf32>
    %74 = arith.truncf %73 : vector<8x64xf32> to vector<8x64xbf16>
    %cst_51 = arith.constant dense<0.000000e+00> : vector<8x64xf32>
    %75 = tpu.matmul %65, %74, %cst_51 {dimension_numbers = #tpu.dot_dimension_numbers<[1], [0], [0], [1], [0, 0, 1, 1], [], []>} : vector<8x8xbf16>, vector<8x64xbf16>, vector<8x64xf32> -> vector<8x64xf32>
    %cst_52 = arith.constant 5.000000e-02 : f32
    %76 = vector.broadcast %cst_52 : f32 to vector<8x64xf32>
    %77 = arith.mulf %76, %73 : vector<8x64xf32>
    %cst_53 = arith.constant 0.949999988 : f32
    %78 = vector.broadcast %cst_53 : f32 to vector<8x64xf32>
    %79 = arith.mulf %78, %75 : vector<8x64xf32>
    %80 = arith.addf %77, %79 : vector<8x64xf32>
    %81 = vector.extract_strided_slice %80 {offsets = [0, 0], sizes = [8, 32], strides = [1, 1]} : vector<8x64xf32> to vector<8x32xf32>
    %c0_54 = arith.constant 0 : index
    %c0_55 = arith.constant 0 : index
    %c0_56 = arith.constant 0 : index
    %c0_57 = arith.constant 0 : index
    %82 = vector.load %arg19[%c0_54, %c0_55, %c0_56, %c0_57] : memref<2x2x8x32xf32, #tpu.memory_space<vmem>>, vector<1x1x8x32xf32>
    %83 = vector.shape_cast %82 : vector<1x1x8x32xf32> to vector<8x32xf32>
    %84 = vector.shape_cast %81 : vector<8x32xf32> to vector<1x1x8x32xf32>
    tpu.vector_store %arg19[%c0_54, %c0_55, %c0_56, %c0_57], %84 {strides = array<i32>} : memref<2x2x8x32xf32, #tpu.memory_space<vmem>>, vector<1x1x8x32xf32>,
    %85 = arith.truncf %81 : vector<8x32xf32> to vector<8x32xbf16>
    %c0_58 = arith.constant 0 : index
    %c32_59 = arith.constant 32 : index
    %86 = vector.load %arg21[%c0_58, %c32_59] : memref<16x96xbf16, #tpu.memory_space<vmem>>, vector<8x32xbf16>
    tpu.vector_store %arg21[%c0_58, %c32_59], %85 {strides = array<i32>} : memref<16x96xbf16, #tpu.memory_space<vmem>>, vector<8x32xbf16>,
    %87 = vector.extract_strided_slice %80 {offsets = [0, 32], sizes = [8, 32], strides = [1, 1]} : vector<8x64xf32> to vector<8x32xf32>
    %c0_60 = arith.constant 0 : index
    %c1_61 = arith.constant 1 : index
    %c0_62 = arith.constant 0 : index
    %c0_63 = arith.constant 0 : index
    %88 = vector.load %arg19[%c0_60, %c1_61, %c0_62, %c0_63] : memref<2x2x8x32xf32, #tpu.memory_space<vmem>>, vector<1x1x8x32xf32>
    %89 = vector.shape_cast %88 : vector<1x1x8x32xf32> to vector<8x32xf32>
    %90 = vector.shape_cast %87 : vector<8x32xf32> to vector<1x1x8x32xf32>
    tpu.vector_store %arg19[%c0_60, %c1_61, %c0_62, %c0_63], %90 {strides = array<i32>} : memref<2x2x8x32xf32, #tpu.memory_space<vmem>>, vector<1x1x8x32xf32>,
    %91 = arith.truncf %87 : vector<8x32xf32> to vector<8x32xbf16>
    %c8 = arith.constant 8 : index
    %c32_64 = arith.constant 32 : index
    %92 = vector.load %arg21[%c8, %c32_64] : memref<16x96xbf16, #tpu.memory_space<vmem>>, vector<8x32xbf16>
    tpu.vector_store %arg21[%c8, %c32_64], %91 {strides = array<i32>} : memref<16x96xbf16, #tpu.memory_space<vmem>>, vector<8x32xbf16>,
    %93 = arith.truncf %80 : vector<8x64xf32> to vector<8x64xbf16>
    %cst_65 = arith.constant dense<0.000000e+00> : vector<8x64xf32>
    %94 = tpu.matmul %65, %93, %cst_65 {dimension_numbers = #tpu.dot_dimension_numbers<[1], [0], [0], [1], [0, 0, 1, 1], [], []>} : vector<8x8xbf16>, vector<8x64xbf16>, vector<8x64xf32> -> vector<8x64xf32>
    %cst_66 = arith.constant 5.000000e-02 : f32
    %95 = vector.broadcast %cst_66 : f32 to vector<8x64xf32>
    %96 = arith.mulf %95, %73 : vector<8x64xf32>
    %cst_67 = arith.constant 0.949999988 : f32
    %97 = vector.broadcast %cst_67 : f32 to vector<8x64xf32>
    %98 = arith.mulf %97, %94 : vector<8x64xf32>
    %99 = arith.addf %96, %98 : vector<8x64xf32>
    %100 = vector.extract_strided_slice %99 {offsets = [0, 0], sizes = [8, 32], strides = [1, 1]} : vector<8x64xf32> to vector<8x32xf32>
    %c1_68 = arith.constant 1 : index
    %c0_69 = arith.constant 0 : index
    %c0_70 = arith.constant 0 : index
    %c0_71 = arith.constant 0 : index
    %101 = vector.load %arg19[%c1_68, %c0_69, %c0_70, %c0_71] : memref<2x2x8x32xf32, #tpu.memory_space<vmem>>, vector<1x1x8x32xf32>
    %102 = vector.shape_cast %101 : vector<1x1x8x32xf32> to vector<8x32xf32>
    %103 = vector.shape_cast %100 : vector<8x32xf32> to vector<1x1x8x32xf32>
    tpu.vector_store %arg19[%c1_68, %c0_69, %c0_70, %c0_71], %103 {strides = array<i32>} : memref<2x2x8x32xf32, #tpu.memory_space<vmem>>, vector<1x1x8x32xf32>,
    %104 = arith.truncf %100 : vector<8x32xf32> to vector<8x32xbf16>
    %c0_72 = arith.constant 0 : index
    %c64_73 = arith.constant 64 : index
    %105 = vector.load %arg21[%c0_72, %c64_73] : memref<16x96xbf16, #tpu.memory_space<vmem>>, vector<8x32xbf16>
    tpu.vector_store %arg21[%c0_72, %c64_73], %104 {strides = array<i32>} : memref<16x96xbf16, #tpu.memory_space<vmem>>, vector<8x32xbf16>,
    %106 = vector.extract_strided_slice %99 {offsets = [0, 32], sizes = [8, 32], strides = [1, 1]} : vector<8x64xf32> to vector<8x32xf32>
    %c1_74 = arith.constant 1 : index
    %c1_75 = arith.constant 1 : index
    %c0_76 = arith.constant 0 : index
    %c0_77 = arith.constant 0 : index
    %107 = vector.load %arg19[%c1_74, %c1_75, %c0_76, %c0_77] : memref<2x2x8x32xf32, #tpu.memory_space<vmem>>, vector<1x1x8x32xf32>
    %108 = vector.shape_cast %107 : vector<1x1x8x32xf32> to vector<8x32xf32>
    %109 = vector.shape_cast %106 : vector<8x32xf32> to vector<1x1x8x32xf32>
    tpu.vector_store %arg19[%c1_74, %c1_75, %c0_76, %c0_77], %109 {strides = array<i32>} : memref<2x2x8x32xf32, #tpu.memory_space<vmem>>, vector<1x1x8x32xf32>,
    %110 = arith.truncf %106 : vector<8x32xf32> to vector<8x32xbf16>
    %c8_78 = arith.constant 8 : index
    %c64_79 = arith.constant 64 : index
    %111 = vector.load %arg21[%c8_78, %c64_79] : memref<16x96xbf16, #tpu.memory_space<vmem>>, vector<8x32xbf16>
    tpu.vector_store %arg21[%c8_78, %c64_79], %110 {strides = array<i32>} : memref<16x96xbf16, #tpu.memory_space<vmem>>, vector<8x32xbf16>,
    %c0_80 = arith.constant 0 : index
    %c0_81 = arith.constant 0 : index
    %112 = vector.load %arg21[%c0_80, %c0_81] : memref<16x96xbf16, #tpu.memory_space<vmem>>, vector<16x96xbf16>
    %c0_82 = arith.constant 0 : index
    %c0_83 = arith.constant 0 : index
    %113 = vector.load %arg9[%c0_82, %c0_83] : memref<96x32xbf16, #tpu.memory_space<vmem>>, vector<96x32xbf16>
    %cst_84 = arith.constant dense<0.000000e+00> : vector<16x32xf32>
    %114 = tpu.matmul %112, %113, %cst_84 {dimension_numbers = #tpu.dot_dimension_numbers<[1], [0], [0], [1], [0, 0, 1, 1], [], []>} : vector<16x96xbf16>, vector<96x32xbf16>, vector<16x32xf32> -> vector<16x32xf32>
    %c0_85 = arith.constant 0 : index
    %c0_86 = arith.constant 0 : index
    %115 = vector.load %arg10[%c0_85, %c0_86] : memref<1x32xf32, #tpu.memory_space<vmem>>, vector<1x32xf32>
    %116 = vector.broadcast %115 : vector<1x32xf32> to vector<16x32xf32>
    %117 = arith.addf %114, %116 : vector<16x32xf32>
    %118 = vector.shape_cast %117 : vector<16x32xf32> to vector<2x8x32xf32>
    %c0_87 = arith.constant 0 : index
    %c0_88 = arith.constant 0 : index
    %c32_89 = arith.constant 32 : index
    %119 = vector.load %arg17[%c0_87, %c0_88, %c32_89] : memref<2x8x64xf32, #tpu.memory_space<vmem>>, vector<2x8x32xf32>
    tpu.vector_store %arg17[%c0_87, %c0_88, %c32_89], %118 {strides = array<i32>} : memref<2x8x64xf32, #tpu.memory_space<vmem>>, vector<2x8x32xf32>,
    %120 = arith.truncf %117 : vector<16x32xf32> to vector<16x32xbf16>
    %c0_90 = arith.constant 0 : index
    %c0_91 = arith.constant 0 : index
    %121 = vector.load %arg13[%c0_90, %c0_91] : memref<32x32xbf16, #tpu.memory_space<vmem>>, vector<32x32xbf16>
    %cst_92 = arith.constant dense<0.000000e+00> : vector<16x32xf32>
    %122 = tpu.matmul %120, %121, %cst_92 {dimension_numbers = #tpu.dot_dimension_numbers<[1], [0], [0], [1], [0, 0, 1, 1], [], []>} : vector<16x32xbf16>, vector<32x32xbf16>, vector<16x32xf32> -> vector<16x32xf32>
    %c0_93 = arith.constant 0 : index
    %c0_94 = arith.constant 0 : index
    %123 = vector.load %arg14[%c0_93, %c0_94] : memref<1x32xf32, #tpu.memory_space<vmem>>, vector<1x32xf32>
    %124 = vector.broadcast %123 : vector<1x32xf32> to vector<16x32xf32>
    %125 = arith.addf %122, %124 : vector<16x32xf32>
    %cst_95 = arith.constant 0.000000e+00 : f32
    %126 = vector.broadcast %cst_95 : f32 to vector<16x32xf32>
    %127 = arith.maximumf %125, %126 : vector<16x32xf32>
    %128 = arith.subf %62, %127 : vector<16x32xf32>
    %129 = arith.truncf %128 : vector<16x32xf32> to vector<16x32xbf16>
    %c0_96 = arith.constant 0 : index
    %c0_97 = arith.constant 0 : index
    %130 = vector.load %arg15[%c0_96, %c0_97] : memref<32x32xbf16, #tpu.memory_space<vmem>>, vector<32x32xbf16>
    %cst_98 = arith.constant dense<0.000000e+00> : vector<16x32xf32>
    %131 = tpu.matmul %129, %130, %cst_98 {dimension_numbers = #tpu.dot_dimension_numbers<[1], [0], [0], [1], [0, 0, 1, 1], [], []>} : vector<16x32xbf16>, vector<32x32xbf16>, vector<16x32xf32> -> vector<16x32xf32>
    %c0_99 = arith.constant 0 : index
    %c0_100 = arith.constant 0 : index
    %132 = vector.load %arg16[%c0_99, %c0_100] : memref<1x32xf32, #tpu.memory_space<vmem>>, vector<1x32xf32>
    %133 = vector.broadcast %132 : vector<1x32xf32> to vector<16x32xf32>
    %134 = arith.addf %131, %133 : vector<16x32xf32>
    %cst_101 = arith.constant 0.000000e+00 : f32
    %135 = vector.broadcast %cst_101 : f32 to vector<16x32xf32>
    %136 = arith.maximumf %134, %135 : vector<16x32xf32>
    %137 = arith.subf %13, %136 : vector<16x32xf32>
    %138 = vector.shape_cast %137 : vector<16x32xf32> to vector<2x8x32xf32>
    %c0_102 = arith.constant 0 : index
    %c0_103 = arith.constant 0 : index
    %c0_104 = arith.constant 0 : index
    %139 = vector.load %arg20[%c0_102, %c0_103, %c0_104] : memref<2x8x32xf32, #tpu.memory_space<vmem>>, vector<2x8x32xf32>
    tpu.vector_store %arg20[%c0_102, %c0_103, %c0_104], %138 {strides = array<i32>} : memref<2x8x32xf32, #tpu.memory_space<vmem>>, vector<2x8x32xf32>,
    return
  }
  func.func @transform_0(%arg0: i32) -> (i32, i32, i32) {
    %c0_i32 = arith.constant 0 : i32
    %c0_i32_0 = arith.constant 0 : i32
    %c0_i32_1 = arith.constant 0 : i32
    return %arg0, %c0_i32, %c0_i32_0 : i32, i32, i32
  }
  func.func @transform_1(%arg0: i32) -> (i32, i32, i32) {
    %c0_i32 = arith.constant 0 : i32
    %c0_i32_0 = arith.constant 0 : i32
    %c0_i32_1 = arith.constant 0 : i32
    return %arg0, %c0_i32, %c0_i32_0 : i32, i32, i32
  }
  func.func @transform_2(%arg0: i32) -> (i32, i32, i32) {
    %c0_i32 = arith.constant 0 : i32
    %c0_i32_0 = arith.constant 0 : i32
    %c0_i32_1 = arith.constant 0 : i32
    return %arg0, %c0_i32, %c0_i32_0 : i32, i32, i32
  }
  func.func @transform_3(%arg0: i32) -> (i32, i32, i32) {
    %c0_i32 = arith.constant 0 : i32
    %c0_i32_0 = arith.constant 0 : i32
    %c0_i32_1 = arith.constant 0 : i32
    %c0_i32_2 = arith.constant 0 : i32
    return %c0_i32, %c0_i32_0, %c0_i32_1 : i32, i32, i32
  }
  func.func @transform_4(%arg0: i32) -> (i32, i32) {
    %c0_i32 = arith.constant 0 : i32
    %c0_i32_0 = arith.constant 0 : i32
    %c0_i32_1 = arith.constant 0 : i32
    return %c0_i32, %c0_i32_0 : i32, i32
  }
  func.func @transform_5(%arg0: i32) -> (i32, i32) {
    %c0_i32 = arith.constant 0 : i32
    %c0_i32_0 = arith.constant 0 : i32
    %c0_i32_1 = arith.constant 0 : i32
    return %c0_i32, %c0_i32_0 : i32, i32
  }
  func.func @transform_6(%arg0: i32) -> (i32, i32) {
    %c0_i32 = arith.constant 0 : i32
    %c0_i32_0 = arith.constant 0 : i32
    %c0_i32_1 = arith.constant 0 : i32
    return %c0_i32, %c0_i32_0 : i32, i32
  }
  func.func @transform_7(%arg0: i32) -> (i32, i32) {
    %c0_i32 = arith.constant 0 : i32
    %c0_i32_0 = arith.constant 0 : i32
    %c0_i32_1 = arith.constant 0 : i32
    return %c0_i32, %c0_i32_0 : i32, i32
  }
  func.func @transform_8(%arg0: i32) -> (i32, i32) {
    %c0_i32 = arith.constant 0 : i32
    %c0_i32_0 = arith.constant 0 : i32
    %c0_i32_1 = arith.constant 0 : i32
    return %c0_i32, %c0_i32_0 : i32, i32
  }
  func.func @transform_9(%arg0: i32) -> (i32, i32) {
    %c0_i32 = arith.constant 0 : i32
    %c0_i32_0 = arith.constant 0 : i32
    %c0_i32_1 = arith.constant 0 : i32
    return %c0_i32, %c0_i32_0 : i32, i32
  }
  func.func @transform_10(%arg0: i32) -> (i32, i32) {
    %c0_i32 = arith.constant 0 : i32
    %c0_i32_0 = arith.constant 0 : i32
    %c0_i32_1 = arith.constant 0 : i32
    return %c0_i32, %c0_i32_0 : i32, i32
  }
  func.func @transform_11(%arg0: i32) -> (i32, i32) {
    %c0_i32 = arith.constant 0 : i32
    %c0_i32_0 = arith.constant 0 : i32
    %c0_i32_1 = arith.constant 0 : i32
    return %c0_i32, %c0_i32_0 : i32, i32
  }
  func.func @transform_12(%arg0: i32) -> (i32, i32) {
    %c0_i32 = arith.constant 0 : i32
    %c0_i32_0 = arith.constant 0 : i32
    %c0_i32_1 = arith.constant 0 : i32
    return %c0_i32, %c0_i32_0 : i32, i32
  }
  func.func @transform_13(%arg0: i32) -> (i32, i32) {
    %c0_i32 = arith.constant 0 : i32
    %c0_i32_0 = arith.constant 0 : i32
    %c0_i32_1 = arith.constant 0 : i32
    return %c0_i32, %c0_i32_0 : i32, i32
  }
  func.func @transform_14(%arg0: i32) -> (i32, i32) {
    %c0_i32 = arith.constant 0 : i32
    %c0_i32_0 = arith.constant 0 : i32
    %c0_i32_1 = arith.constant 0 : i32
    return %c0_i32, %c0_i32_0 : i32, i32
  }
  func.func @transform_15(%arg0: i32) -> (i32, i32) {
    %c0_i32 = arith.constant 0 : i32
    %c0_i32_0 = arith.constant 0 : i32
    %c0_i32_1 = arith.constant 0 : i32
    return %c0_i32, %c0_i32_0 : i32, i32
  }
  func.func @transform_16(%arg0: i32) -> (i32, i32, i32) {
    %c0_i32 = arith.constant 0 : i32
    %c0_i32_0 = arith.constant 0 : i32
    %c0_i32_1 = arith.constant 0 : i32
    return %arg0, %c0_i32, %c0_i32_0 : i32, i32, i32
  }
  func.func @transform_17(%arg0: i32) -> (i32, i32, i32, i32) {
    %c0_i32 = arith.constant 0 : i32
    %c0_i32_0 = arith.constant 0 : i32
    %c0_i32_1 = arith.constant 0 : i32
    %c0_i32_2 = arith.constant 0 : i32
    return %c0_i32, %arg0, %c0_i32_0, %c0_i32_1 : i32, i32, i32, i32
  }
  func.func @transform_18(%arg0: i32) -> (i32, i32, i32, i32) {
    %c0_i32 = arith.constant 0 : i32
    %c0_i32_0 = arith.constant 0 : i32
    %c0_i32_1 = arith.constant 0 : i32
    %c0_i32_2 = arith.constant 0 : i32
    return %c0_i32, %arg0, %c0_i32_0, %c0_i32_1 : i32, i32, i32, i32
  }
  func.func @transform_19(%arg0: i32) -> (i32, i32, i32) {
    %c0_i32 = arith.constant 0 : i32
    %c0_i32_0 = arith.constant 0 : i32
    %c0_i32_1 = arith.constant 0 : i32
    return %arg0, %c0_i32, %c0_i32_0 : i32, i32, i32
  }
}

</mosaic_0001>

<bundles_post_ra>
// kernel: tpu_custom_call.1
= control target key start
LH: loop header
LB: loop body
LE: loop exit
PB: predicated region body
PF: predicated region fallthrough
CT: control target
= control target key end

     0   :  { %s1726_s0 = inlined_call_operand.vmem [shape: bf16[2,8,16], index: 0, kind: input, shape index: {}]   ;;  %s1727_s1 = inlined_call_operand.vmem [shape: f32[2,8,32], index: 1, kind: input, shape index: {}]   ;;  %s1728_s2 = inlined_call_operand.vmem [shape: bf16[2,8,8], index: 2, kind: input, shape index: {}]   ;;  %s1729_s3 = inlined_call_operand.vmem [shape: bf16[1,8,8], index: 3, kind: input, shape index: {}]   ;;  %s1730_s4 = inlined_call_operand.vmem [shape: bf16[16,32], index: 4, kind: input, shape index: {}]   ;;  %s1731_s5 = inlined_call_operand.vmem [shape: f32[1,32], index: 5, kind: input, shape index: {}]   ;;  %s1732_s6 = inlined_call_operand.vmem [shape: bf16[96,32], index: 6, kind: input, shape index: {}]   ;;  %s1733_s7 = inlined_call_operand.vmem [shape: f32[1,32], index: 7, kind: input, shape index: {}]   ;;  %s1734_s8 = inlined_call_operand.vmem [shape: bf16[96,32], index: 8, kind: input, shape index: {}]   ;;  %s1735_s9 = inlined_call_operand.vmem [shape: f32[1,32], index: 9, kind: input, shape index: {}]   ;;  %s1736_s10 = inlined_call_operand.vmem [shape: bf16[32,32], index: 10, kind: input, shape index: {}]   ;;  %s1737_s11 = inlined_call_operand.vmem [shape: f32[1,32], index: 11, kind: input, shape index: {}]   ;;  %s1738_s12 = inlined_call_operand.vmem [shape: bf16[32,32], index: 12, kind: input, shape index: {}]   ;;  %s1739_s13 = inlined_call_operand.vmem [shape: f32[1,32], index: 13, kind: input, shape index: {}]   ;;  %s1740_s14 = inlined_call_operand.vmem [shape: bf16[32,32], index: 14, kind: input, shape index: {}]   ;;  %s1741_s15 = inlined_call_operand.vmem [shape: f32[1,32], index: 15, kind: input, shape index: {}]   ;;  %s1742_s16 = inlined_call_operand.hbm [shape: f32[2,8,64], index: 16, kind: output, shape index: {0}]   ;;  %s1743_s17 = inlined_call_operand.hbm [shape: f32[2,2,8,32], index: 17, kind: output, shape index: {1}]   ;;  %s1744_s18 = inlined_call_operand.hbm [shape: f32[2,2,8,32], index: 18, kind: output, shape index: {2}]   ;;  %s1745_s19 = inlined_call_operand.hbm [shape: f32[2,8,32], index: 19, kind: output, shape index: {3}]  }
   0x1   :  { %1748 = sst [smem:[#allocation13_spill]] %s1726_s0 }
   0x2   :  { %1749 = sst [smem:[#allocation14_spill]] %s1727_s1 }
   0x3   :  { %1750 = sst [smem:[#allocation15_spill]] %s1728_s2 }
   0x4   :  { %1751 = sst [smem:[#allocation16_spill]] %s1729_s3 }
   0x5   :  { %25 = vsyncpa [#allocation4], 0 }
   0x6   :  { %26 = vsyncpa [#allocation6], 0  ;;  %v1249_v0 = vld [vmem:[%s1730_s4] sm:$0xff]   ;;  %v1365_v1 = vmov 0.0   ;;  %s1752_s1 = sld [smem:[#allocation13_spill]]  ;;  %vm1366_vm0 = vmmov 0  }
   0x7   :  { %1140 = vmatprep.subr.bf16.mxu0 %v1365_v1  ;;  %1146 = vmatprep.subr.bf16.mxu1 %v1365_v1  ;;  %vm83_vm1 = vcmask 130048  }
   0x8   :  { %1141 = vmatpush3.bf16.msra.mxu0 %v1249_v0  ;;  %1142 = vmatprep.mubr.msk.bf16.mxu0 %vm1366_vm0, %v1365_v1 }
   0x9   :  { %1148 = vmatprep.mubr.msk.bf16.mxu1 %vm1366_vm0, %v1365_v1  ;;  %1152 = vmatprep.subr.bf16.mxu0 %v1365_v1 }
   0xc   :  { %v1250_v2 = vld [vmem:[%s1752_s1] sm:$0xff]  }
   0xd   :  { %1143 = vmatmul.mubr.msk.bf16.vlgmr.msra.gmra.mxu0 %vm83_vm1, %v1250_v2 }
   0xe   :  { %1154 = vmatprep.mubr.msk.bf16.mxu0 %vm1366_vm0, %v1365_v1 }
   0xf   :  { %27 = vsyncpa [#allocation9], 0  ;;  %v1041_v3 = vld [vmem:[%s1731_s5] ss:$0 sm:$0xff]  ;;  %s1753_s24 = sld [smem:[#allocation14_spill]]  ;;  %vm163_vm2 = vcmask 1043456  }
  0x10   :  { %vm154_vm3 = vcmask 257024   ;;  %s1754_s27 = sld [smem:[#allocation15_spill]]  ;;  %vm159_vm4 = vcmask 64512   ;;  %vm259_vm5 = vcmask 261120   ;;  %s1367_s0 = smov 32   ;;  %v1251_v46 = vld [vmem:[%s1732_s6 + $0x28] sm:$0xff]  }
  0x11   :  { %v1252_v47 = vld [vmem:[%s1732_s6 + $0x20] sm:$0xff]   ;;  %v1253_v48 = vld [vmem:[%s1732_s6 + $0x18] sm:$0xff]   ;;  %vm274_vm6 = vcmask 519424   ;;  %v1254_v51 = vld [vmem:[%s1732_s6 + $0x10] sm:$0xff]   ;;  %s1368_s26 = smov 64   ;;  %vm384_vm7 = vcmask 781824  }
  0x12   :  { %v1255_v52 = vld [vmem:[%s1732_s6 + $0x8] sm:$0xff]   ;;  %v1256_v54 = vld [vmem:[%s1732_s6] sm:$0xff]   ;;  %vm449_vm8 = vcmask 785408   ;;  %s1755_s1 = sld [smem:[#allocation16_spill]]  ;;  %s1369_s30 = smov 96   ;;  %vm829_vm9 = vcmask 523520  }
  0x13   :  { %s1371_s2 = smov [#allocation3]  }
  0x15   :  { %v1497_v16 = vld [vmem:[%s1753_s24] sm:$0xff]  ;;  %v1505_v19 = vld [vmem:[%s1753_s24 + $0x8] sm:$0xff] }
  0x16   :  { %v144_v24 = vld [vmem:[%s1754_s27] sm:$0xf]  ;;  %v145_v27 = vld [vmem:[%s1754_s27 + $0x4] sm:$0xf] }
  0xcd   :  { %v121_v4 = vpop.f32.mrf.mxu0 }
  0xce   :  { %v122_v5 = vadd.f32 %v1041_v3, %v121_v4 }
  0xcf   :  { %v1144_v6 = vpop.f32.mrf.mxu0 }
  0xd0   :  { %v1045_v7 = vmul.f32 -1.442695, %v122_v5 }
  0xd1   :  { %v124_v8 = vpop.f32.mrf.mxu0 }
  0xd2   :  { %1271 = vpow2.f32 %v1045_v7  ;;  %v125_v9 = vadd.f32 %v1041_v3, %v124_v8  ;;  %v1258_v8 = vld [vmem:[%s1736_s10 + $0x8] sm:$0xff]  }
  0xd3   :  { %v1145_v10 = vpop.f32.mrf.mxu0 }
  0xd4   :  { %v1046_v11 = vmul.f32 -1.442695, %v125_v9  ;;  %v1259_v9 = vld [vmem:[%s1736_s10] sm:$0xff]  }
  0xd5   :  { %v1057_v10 = vld [vmem:[%s1733_s7] ss:$0 sm:$0xff] }
  0xd6   :  { %1273 = vpow2.f32 %v1046_v11 }
  0xdf   :  { %v1272_v12 = vpop.eup %1271 }
  0xe0   :  { %v134_v13 = vadd.f32 1.0, %v1272_v12 }
  0xe2   :  { %1275 = vrcp.f32 %v134_v13 }
  0xe3   :  { %v1274_v14 = vpop.eup %1273 }
  0xe4   :  { %v135_v15 = vadd.f32 1.0, %v1274_v14 }
  0xe6   :  { %1277 = vrcp.f32 %v135_v15 }
  0xef   :  { %v1276_v17 = vpop.eup %1275 }
  0xf0   :  { %v1500_v18 = vmul.f32 %v1276_v17, %v1497_v16 }
  0xf2   :  { %v1093_v20 = vpack.c.bf16 %v1500_v18, %v1500_v18  ;;  %v253_v29 = vmul.f32 0.05, %v1500_v18 }
  0xf3   :  { %v1278_v21 = vpop.eup %1277 }
  0xf4   :  { %v165_v22 = vsel %vm163_vm2, %v1093_v20, 0  ;;  %v1511_v23 = vmul.f32 %v1278_v21, %v1505_v19  ;;  %155 = vst.msk [vmem:[#allocation2] sm:$0xf] %vm154_vm3, %v1093_v20  ;;  %v1066_v21 = vld [vmem:[%s1737_s11] ss:$0 sm:$0xff] }
  0xf5   :  { %1147 = vmatpush3.bf16.msra.mxu1 %v165_v22 }
  0xf6   :  { %v1094_v25 = vpack.c.bf16 %v1511_v23, %v1511_v23  ;;  %1158 = vmatprep.subr.bf16.mxu1 %v1365_v1  ;;  %v254_v35 = vmul.f32 0.05, %v1511_v23 }
  0xf8   :  { %1149 = vmatmul.mubr.msk.bf16.vlgmr.msra.gmra.mxu1 %vm159_vm4, %v144_v24  ;;  %v211_v26 = vsel %vm163_vm2, %v1094_v25, 0  ;;  %156 = vst.msk [vmem:[#allocation2 + $0x4] sm:$0xf] %vm154_vm3, %v1094_v25 }
  0xf9   :  { %1153 = vmatpush3.bf16.msra.mxu0 %v211_v26  ;;  %1160 = vmatprep.mubr.msk.bf16.mxu1 %vm1366_vm0, %v1365_v1 }
  0xfa   :  { %1164 = vmatprep.subr.bf16.mxu0 %v1365_v1 }
  0xfc   :  { %1155 = vmatmul.mubr.msk.bf16.vlgmr.msra.gmra.mxu0 %vm159_vm4, %v145_v27 }
  0xfd   :  { %1166 = vmatprep.mubr.msk.bf16.mxu0 %vm1366_vm0, %v1365_v1 }
 0x1b8   :  { %v201_v28 = vpop.f32.mrf.mxu1 }
 0x1b9   :  { %v255_v30 = vmul.f32 0.95, %v201_v28 }
 0x1ba   :  { %v1150_v31 = vpop.f32.mrf.mxu1 }
 0x1bb   :  { %v257_v32 = vadd.f32 %v255_v30, %v253_v29 }
 0x1bc   :  { %v204_v33 = vpop.f32.mrf.mxu1  ;;  %v247_v34 = vpop.f32.mrf.mxu0 }
 0x1bd   :  { %260 = vst.msk [vmem:[#allocation5] sm:$0xff] %vm259_vm5, %v257_v32  ;;  %v256_v36 = vmul.f32 0.95, %v247_v34  ;;  %v1095_v37 = vpack.c.bf16 %v257_v32, %v257_v32 }
 0x1be   :  { %v1151_v38 = vpop.f32.mrf.mxu1  ;;  %v1156_v39 = vpop.f32.mrf.mxu0 }
 0x1bf   :  { %v258_v40 = vadd.f32 %v256_v36, %v254_v35  ;;  %268 = vrot.lane.b32.xlu0 %v1095_v37, %s1367_s0  ;;  %v280_v41 = vsel %vm163_vm2, %v1095_v37, 0 }
 0x1c0   :  { %v250_v42 = vpop.f32.mrf.mxu0  ;;  %1159 = vmatpush3.bf16.msra.mxu1 %v280_v41 }
 0x1c1   :  { %261 = vst.msk [vmem:[#allocation5 + $0x8] sm:$0xff] %vm259_vm5, %v258_v40  ;;  %v1096_v43 = vpack.c.bf16 %v258_v40, %v258_v40  ;;  %1170 = vmatprep.subr.bf16.mxu1 %v1365_v1 }
 0x1c2   :  { %v1157_v44 = vpop.f32.mrf.mxu0 }
 0x1c3   :  { %1161 = vmatmul.mubr.msk.bf16.vlgmr.msra.gmra.mxu1 %vm159_vm4, %v144_v24  ;;  %270 = vrot.lane.b32.xlu0 %v1096_v43, %s1367_s0  ;;  %v323_v45 = vsel %vm163_vm2, %v1096_v43, 0 }
 0x1c4   :  { %1165 = vmatpush3.bf16.msra.mxu0 %v323_v45  ;;  %1182 = vmatprep.mubr.msk.bf16.mxu1 %vm1366_vm0, %v1365_v1 }
 0x1c5   :  { %1186 = vmatprep.subr.bf16.mxu0 %v1365_v1  ;;  %1171 = vmatpush3.bf16.msra.mxu1 %v1251_v46 }
 0x1c6   :  { %1172 = vmatprep.subr.bf16.mxu1 %v1365_v1 }
 0x1c7   :  { %1167 = vmatmul.mubr.msk.bf16.vlgmr.msra.gmra.mxu0 %vm159_vm4, %v145_v27 }
 0x1c8   :  { %1190 = vmatprep.mubr.msk.bf16.mxu0 %vm1366_vm0, %v1365_v1  ;;  %1187 = vmatpush3.bf16.msra.mxu0 %v1258_v8 }
 0x1c9   :  { %1173 = vmatpush3.bf16.msra.mxu1 %v1252_v47  ;;  %1188 = vmatprep.subr.bf16.mxu0 %v1365_v1  ;;  %v1260_v47 = vld [vmem:[%s1734_s8 + $0x28] sm:$0xff]  }
 0x1ca   :  { %1174 = vmatprep.subr.bf16.mxu1 %v1365_v1 }
 0x1cc   :  { %1189 = vmatpush3.bf16.msra.mxu0 %v1259_v9 }
 0x1cd   :  { %1175 = vmatpush3.bf16.msra.mxu1 %v1253_v48  ;;  %1194 = vmatprep.subr.bf16.mxu0 %v1365_v1  ;;  %v1261_v48 = vld [vmem:[%s1734_s8 + $0x20] sm:$0xff]  }
 0x1ce   :  { %1176 = vmatprep.subr.bf16.mxu1 %v1365_v1 }
 0x1d1   :  { %1177 = vmatpush3.bf16.msra.mxu1 %v1254_v51 }
 0x1d2   :  { %1178 = vmatprep.subr.bf16.mxu1 %v1365_v1 }
 0x1d5   :  { %1179 = vmatpush3.bf16.msra.mxu1 %v1255_v52  ;;  %v1264_v52 = vld [vmem:[%s1734_s8 + $0x8] sm:$0xff]  }
 0x1d6   :  { %1180 = vmatprep.subr.bf16.mxu1 %v1365_v1 }
 0x1d9   :  { %1181 = vmatpush3.bf16.msra.mxu1 %v1256_v54 }
 0x1da   :  { %1206 = vmatprep.subr.bf16.mxu1 %v1365_v1 }
 0x231   :  { %v269_v49 = vpop.permute.xlu0 %268 }
 0x232   :  { %275 = vst.msk [vmem:[#allocation2] sm:$0xf] %vm274_vm6, %v269_v49  ;;  %v1262_v49 = vld [vmem:[%s1734_s8 + $0x18] sm:$0xff]  }
 0x235   :  { %v271_v50 = vpop.permute.xlu0 %270 }
 0x236   :  { %276 = vst.msk [vmem:[#allocation2 + $0x4] sm:$0xf] %vm274_vm6, %v271_v50  ;;  %v1263_v50 = vld [vmem:[%s1734_s8 + $0x10] sm:$0xff]  }
 0x283   :  { %v316_v53 = vpop.f32.mrf.mxu1 }
 0x284   :  { %v365_v55 = vmul.f32 0.95, %v316_v53  ;;  %v1265_v53 = vld [vmem:[%s1734_s8] sm:$0xff]  }
 0x285   :  { %v1162_v56 = vpop.f32.mrf.mxu1 }
 0x286   :  { %v367_v57 = vadd.f32 %v365_v55, %v253_v29 }
 0x287   :  { %v319_v58 = vpop.f32.mrf.mxu1  ;;  %v359_v59 = vpop.f32.mrf.mxu0 }
 0x288   :  { %370 = vst.msk [vmem:[#allocation5 + $0x10] sm:$0xff] %vm259_vm5, %v367_v57  ;;  %v366_v60 = vmul.f32 0.95, %v359_v59  ;;  %v1097_v61 = vpack.c.bf16 %v367_v57, %v367_v57 }
 0x289   :  { %v1163_v62 = vpop.f32.mrf.mxu1  ;;  %v1168_v63 = vpop.f32.mrf.mxu0 }
 0x28a   :  { %v368_v0 = vadd.f32 %v366_v60, %v254_v35  ;;  %378 = vrot.lane.b32.xlu1 %v1097_v61, %s1368_s26 }
 0x28b   :  { %v362_v2 = vpop.f32.mrf.mxu0 }
 0x28c   :  { %371 = vst.msk [vmem:[#allocation5 + $0x18] sm:$0xff] %vm259_vm5, %v368_v0  ;;  %v1098_v3 = vpack.c.bf16 %v368_v0, %v368_v0 }
 0x28d   :  { %v1169_v4 = vpop.f32.mrf.mxu0 }
 0x28e   :  { %380 = vrot.lane.b32.xlu1 %v1098_v3, %s1368_s26  ;;  %v1267_v3 = vld [vmem:[%s1738_s12 + $0x8] sm:$0xff]   ;;  %v1268_v4 = vld [vmem:[%s1738_s12] sm:$0xff]  }
 0x2fc   :  { %v379_v5 = vpop.permute.xlu1 %378 }
 0x2fd   :  { %385 = vst.msk [vmem:[#allocation2] sm:$0xf] %vm384_vm7, %v379_v5  ;;  %v1076_v5 = vld [vmem:[%s1735_s9] ss:$0 sm:$0xff] }
 0x300   :  { %v381_v6 = vpop.permute.xlu1 %380 }
 0x301   :  { %386 = vst.msk [vmem:[#allocation2 + $0x4] sm:$0xf] %vm384_vm7, %v381_v6 }
 0x308   :  { %v1257_v7 = vld [vmem:[#allocation2] sm:$0xff]  }
 0x309   :  { %1183 = vmatmul.mubr.msk.bf16.vlgmr.msra.gmra.mxu1 %vm449_vm8, %v1257_v7 }
 0x30a   :  { %1218 = vmatprep.mubr.msk.bf16.mxu1 %vm1366_vm0, %v1365_v1  ;;  %1207 = vmatpush3.bf16.msra.mxu1 %v1260_v47 }
 0x30b   :  { %1208 = vmatprep.subr.bf16.mxu1 %v1365_v1 }
 0x30e   :  { %1209 = vmatpush3.bf16.msra.mxu1 %v1261_v48 }
 0x30f   :  { %1210 = vmatprep.subr.bf16.mxu1 %v1365_v1 }
 0x312   :  { %1211 = vmatpush3.bf16.msra.mxu1 %v1262_v49 }
 0x313   :  { %1212 = vmatprep.subr.bf16.mxu1 %v1365_v1 }
 0x316   :  { %1213 = vmatpush3.bf16.msra.mxu1 %v1263_v50 }
 0x317   :  { %1214 = vmatprep.subr.bf16.mxu1 %v1365_v1 }
 0x31a   :  { %1215 = vmatpush3.bf16.msra.mxu1 %v1264_v52 }
 0x31b   :  { %1216 = vmatprep.subr.bf16.mxu1 %v1365_v1 }
 0x31e   :  { %1217 = vmatpush3.bf16.msra.mxu1 %v1265_v53 }
 0x3c9   :  { %v487_v11 = vpop.f32.mrf.mxu1 }
 0x3ca   :  { %v488_v12 = vadd.f32 %v1057_v10, %v487_v11 }
 0x3cb   :  { %v1184_v13 = vpop.f32.mrf.mxu1 }
 0x3cc   :  { %494 = vst.msk [vmem:[#allocation3] sm:$0xff] %vm259_vm5, %v488_v12  ;;  %v1269_v13 = vld [vmem:[%s1740_s14 + $0x8] sm:$0xff]  }
 0x3cd   :  { %v490_v14 = vpop.f32.mrf.mxu1 }
 0x3ce   :  { %v491_v15 = vadd.f32 %v1057_v10, %v490_v14  ;;  %v1270_v14 = vld [vmem:[%s1740_s14] sm:$0xff]   ;;  %s1370_s14 = smov [#allocation5]  }
 0x3cf   :  { %v1185_v17 = vpop.f32.mrf.mxu1  ;;  %s995_s22 = sshll.u32 %s1370_s14, 4  ;;  %s996_s22 = int_to_ptr.vmem [resolvable:$true] %s995_s22 }
 0x3d0   :  { %495 = vst.msk [vmem:[#allocation3 + $0x8] sm:$0xff] %vm259_vm5, %v491_v15  ;;  %v496_v20 = vpack.c.bf16 %v491_v15, %v488_v12  ;;  %s1279_s23 = scalar_lea.vmem %s996_s22, 512  ;;  %p1284_p1 = scmp.lt.s32.totalorder %s996_s22, %s996_s22 }
 0x3d1   :  { %p1280_p0 = scmp.ne.s32.totalorder %s996_s22, %s1279_s23  ;;  %p1285_p2 = scmp.lt.s32.totalorder %s1279_s23, %s1279_s23 }
 0x3d2   :  { %1191 = vmatmul.mubr.msk.bf16.vlgmr.msra.gmra.mxu0 %vm259_vm5, %v496_v20  ;;  %v1085_v20 = vld [vmem:[%s1739_s13] ss:$0 sm:$0xff]  ;;  %s983_s13 = sshll.u32 %s1371_s2, 4  ;;  %s984_s13 = int_to_ptr.vmem [resolvable:$true] %s983_s13 }
 0x3d3   :  { %1196 = vmatprep.mubr.msk.bf16.mxu0 %vm1366_vm0, %v1365_v1  ;;  %p1286_p3 = por %p1285_p2, %p1284_p1 }
 0x3d5   :  { %p1287_p4 = pnand %p1286_p3, %p1280_p0 }
 0x492   :  { %v557_v22 = vpop.f32.mrf.mxu0 }
 0x493   :  { %v558_v24 = vadd.f32 %v1066_v21, %v557_v22 }
 0x494   :  { %v1192_v25 = vpop.f32.mrf.mxu0 }
 0x495   :  { %v564_v26 = vmax.f32 %v558_v24, 0.0 }
 0x496   :  { %v560_v27 = vpop.f32.mrf.mxu0 }
 0x497   :  { %v1603_v28 = vsub.f32 %v1500_v18, %v564_v26  ;;  %v561_v29 = vadd.f32 %v1066_v21, %v560_v27 }
 0x498   :  { %v1193_v30 = vpop.f32.mrf.mxu0 }
 0x499   :  { %v1099_v31 = vpack.c.bf16 %v1603_v28, %v1603_v28  ;;  %v565_v32 = vmax.f32 %v561_v29, 0.0 }
 0x49b   :  { %577 = vst.msk [vmem:[#allocation2] sm:$0xf] %vm154_vm3, %v1099_v31  ;;  %v1609_v33 = vsub.f32 %v1511_v23, %v565_v32  ;;  %v568_v23 = vld [vmem:[%s1755_s1] sm:$0xf] }
 0x49d   :  { %v1100_v34 = vpack.c.bf16 %v1609_v33, %v1609_v33  ;;  %580 = vrot.lane.b32.xlu0 %v1609_v33, %s1367_s0 }
 0x49f   :  { %578 = vst.msk [vmem:[#allocation2 + $0x4] sm:$0xf] %vm154_vm3, %v1100_v34 }
 0x50f   :  { %v581_v18 = vpop.permute.xlu0 %580 }
 0x510   :  { %v583_v35 = vsel %vm259_vm5, %v1603_v28, %v581_v18 }
 0x511   :  { %v584_v36 = vpack.c.bf16 %v583_v35, %v583_v35  ;;  %v631_v39 = vmul.f32 0.05, %v583_v35 }
 0x513   :  { %v589_v37 = vsel %vm163_vm2, %v584_v36, 0 }
 0x514   :  { %1195 = vmatpush3.bf16.msra.mxu0 %v589_v37 }
 0x515   :  { %1200 = vmatprep.subr.bf16.mxu0 %v1365_v1 }
 0x517   :  { %1197 = vmatmul.mubr.msk.bf16.vlgmr.msra.gmra.mxu0 %vm159_vm4, %v568_v23 }
 0x518   :  { %1202 = vmatprep.mubr.msk.bf16.mxu0 %vm1366_vm0, %v1365_v1 }
 0x5d7   :  { %v625_v38 = vpop.f32.mrf.mxu0 }
 0x5d8   :  { %v632_v40 = vmul.f32 0.95, %v625_v38 }
 0x5d9   :  { %v1198_v41 = vpop.f32.mrf.mxu0 }
 0x5da   :  { %v633_v42 = vadd.f32 %v632_v40, %v631_v39 }
 0x5db   :  { %v628_v43 = vpop.f32.mrf.mxu0 }
 0x5dc   :  { %634 = vst.msk [vmem:[#allocation7] sm:$0xff] %vm259_vm5, %v633_v42  ;;  %v635_v44 = vpack.c.bf16 %v633_v42, %v633_v42 }
 0x5dd   :  { %v1199_v45 = vpop.f32.mrf.mxu0 }
 0x5de   :  { %639 = vrot.lane.b32.xlu1 %v635_v44, %s1367_s0  ;;  %649 = vst.msk [vmem:[#allocation2 + $0x4] sm:$0xf] %vm274_vm6, %v635_v44  ;;  %v651_v46 = vsel %vm163_vm2, %v635_v44, 0 }
 0x5df   :  { %1201 = vmatpush3.bf16.msra.mxu0 %v651_v46 }
 0x5e0   :  { %1222 = vmatprep.subr.bf16.mxu0 %v1365_v1 }
 0x5e2   :  { %1203 = vmatmul.mubr.msk.bf16.vlgmr.msra.gmra.mxu0 %vm159_vm4, %v568_v23 }
 0x5e3   :  { %1226 = vmatprep.mubr.msk.bf16.mxu0 %vm1366_vm0, %v1365_v1  ;;  %1223 = vmatpush3.bf16.msra.mxu0 %v1267_v3 }
 0x5e4   :  { %1224 = vmatprep.subr.bf16.mxu0 %v1365_v1 }
 0x5e7   :  { %1225 = vmatpush3.bf16.msra.mxu0 %v1268_v4 }
 0x5e8   :  { %1230 = vmatprep.subr.bf16.mxu0 %v1365_v1 }
 0x650   :  { %v640_v51 = vpop.permute.xlu1 %639 }
 0x651   :  { %642 = vst.msk [vmem:[#allocation2] sm:$0xf] %vm274_vm6, %v640_v51 }
 0x6a2   :  { %v687_v54 = vpop.f32.mrf.mxu0 }
 0x6a3   :  { %v693_v55 = vmul.f32 0.95, %v687_v54 }
 0x6a4   :  { %v1204_v56 = vpop.f32.mrf.mxu0 }
 0x6a5   :  { %v694_v57 = vadd.f32 %v693_v55, %v631_v39 }
 0x6a6   :  { %v690_v58 = vpop.f32.mrf.mxu0 }
 0x6a7   :  { %696 = vst.msk [vmem:[#allocation7 + $0x10] sm:$0xff] %vm259_vm5, %v694_v57  ;;  %v1102_v59 = vpack.c.bf16 %v694_v57, %v694_v57 }
 0x6a8   :  { %v1205_v60 = vpop.f32.mrf.mxu0 }
 0x6a9   :  { %711 = vrot.lane.b32.xlu1 %v1102_v59, %s1367_s0  ;;  %701 = vrot.lane.b32.xlu0 %v1102_v59, %s1368_s26 }
 0x6ad   :  { %706 = vrot.lane.b32.xlu1 %v694_v57, %s1369_s30  ;;  %644 = vrot.lane.b32.xlu0 %v633_v42, %s1369_s30 }
 0x71b   :  { %v712_v61 = vpop.permute.xlu1 %711  ;;  %v702_v62 = vpop.permute.xlu0 %701 }
 0x71c   :  { %714 = vst.msk [vmem:[#allocation2 + $0x4] sm:$0xf] %vm384_vm7, %v712_v61  ;;  %704 = vst.msk [vmem:[#allocation2] sm:$0xf] %vm384_vm7, %v702_v62 }
 0x71f   :  { %v707_v63 = vpop.permute.xlu1 %706  ;;  %v645_v0 = vpop.permute.xlu0 %644 }
 0x720   :  { %710 = vst.msk [vmem:[#allocation7 + $0x18] sm:$0xff] %vm259_vm5, %v707_v63  ;;  %648 = vst.msk [vmem:[#allocation7 + $0x8] sm:$0xff] %vm259_vm5, %v645_v0 }
 0x723   :  { %v1266_v2 = vld [vmem:[#allocation2] sm:$0xff]  }
 0x724   :  { %1219 = vmatmul.mubr.msk.bf16.vlgmr.msra.gmra.mxu1 %vm449_vm8, %v1266_v2 }
 0x7e4   :  { %v814_v6 = vpop.f32.mrf.mxu1 }
 0x7e5   :  { %v815_v7 = vadd.f32 %v1076_v5, %v814_v6 }
 0x7e6   :  { %v1220_v8 = vpop.f32.mrf.mxu1 }
 0x7e7   :  { %823 = vrot.lane.b32.xlu0 %v815_v7, %s1367_s0 }
 0x7e8   :  { %v817_v9 = vpop.f32.mrf.mxu1 }
 0x7e9   :  { %v818_v10 = vadd.f32 %v1076_v5, %v817_v9 }
 0x7ea   :  { %v1221_v11 = vpop.f32.mrf.mxu1 }
 0x7eb   :  { %v832_v12 = vpack.c.bf16 %v818_v10, %v815_v7  ;;  %825 = vrot.lane.b32.xlu1 %v818_v10, %s1367_s0 }
 0x7ed   :  { %1227 = vmatmul.mubr.msk.bf16.vlgmr.msra.gmra.mxu0 %vm259_vm5, %v832_v12 }
 0x7ee   :  { %1234 = vmatprep.mubr.msk.bf16.mxu0 %vm1366_vm0, %v1365_v1  ;;  %1231 = vmatpush3.bf16.msra.mxu0 %v1269_v13 }
 0x7ef   :  { %1232 = vmatprep.subr.bf16.mxu0 %v1365_v1 }
 0x7f2   :  { %1233 = vmatpush3.bf16.msra.mxu0 %v1270_v14 }
 0x859   :  { %v824_v15 = vpop.permute.xlu0 %823 }
 0x85a   :  { %830 = vst.msk [vmem:[#allocation3] sm:$0xff] %vm829_vm9, %v824_v15 }
 0x85d   :  { %v826_v17 = vpop.permute.xlu1 %825 }
 0x85e   :  { %831 = vst.msk [vmem:[#allocation3 + $0x8] sm:$0xff] %vm829_vm9, %v826_v17 }
 0x8ad   :  { %v893_v21 = vpop.f32.mrf.mxu0 }
 0x8ae   :  { %v894_v22 = vadd.f32 %v1085_v20, %v893_v21 }
 0x8af   :  { %v1228_v24 = vpop.f32.mrf.mxu0 }
 0x8b0   :  { %v900_v26 = vmax.f32 %v894_v22, 0.0 }
 0x8b1   :  { %v896_v25 = vpop.f32.mrf.mxu0 }
 0x8b2   :  { %v897_v1 = vadd.f32 %v1085_v20, %v896_v25  ;;  %v902_v30 = vsub.f32 %v1603_v28, %v900_v26 }
 0x8b3   :  { %v1229_v27 = vpop.f32.mrf.mxu0 }
 0x8b4   :  { %v901_v29 = vmax.f32 %v897_v1, 0.0 }
 0x8b6   :  { %v903_v31 = vsub.f32 %v1609_v33, %v901_v29 }
 0x8b8   :  { %v904_v32 = vpack.c.bf16 %v903_v31, %v902_v30 }
 0x8ba   :  { %1235 = vmatmul.mubr.msk.bf16.vlgmr.msra.gmra.mxu0 %vm259_vm5, %v904_v32 }
 0x8bb   :  { %1290 = shalt.err (!%p1287_p4)
}
 0x8bc   :  { %s1372_s24 = smov 128   ;;  %s1373_s5 = smov 8  }
 0x8bd   :  { %1001 = dma.vmem_to_hbm [thread:$0]  %s996_s22, 512, %s1743_s17, [#allocation6], %s1372_s24, %s1372_s24, %s1373_s5  }
 0x8be   :  { %s1299_s6 = scalar_lea.vmem %s984_s13, 256  ;;  %p1304_p6 = scmp.lt.s32.totalorder %s984_s13, %s984_s13 }
 0x8bf   :  { %p1300_p5 = scmp.ne.s32.totalorder %s984_s13, %s1299_s6  ;;  %p1305_p7 = scmp.lt.s32.totalorder %s1299_s6, %s1299_s6 }
 0x8c1   :  { %p1306_p8 = por %p1305_p7, %p1304_p6 }
 0x8c3   :  { %p1307_p9 = pnand %p1306_p8, %p1300_p5 }
 0x8c5   :  { %1310 = shalt.err (!%p1307_p9)
}
 0x8c6   :  { %989 = dma.vmem_to_hbm [thread:$0]  %s984_s13, 256, %s1742_s16, [#allocation4], %s1372_s24, %s1372_s24, %s1373_s5  }
 0x8c7   :  { %s1374_s29 = smov [#allocation7]  }
 0x8c8   :  { %s1007_s30 = sshll.u32 %s1374_s29, 4  ;;  %s1008_s30 = int_to_ptr.vmem [resolvable:$true] %s1007_s30 }
 0x8c9   :  { %s1319_s8 = scalar_lea.vmem %s1008_s30, 512  ;;  %p1324_p11 = scmp.lt.s32.totalorder %s1008_s30, %s1008_s30 }
 0x8ca   :  { %p1320_p10 = scmp.ne.s32.totalorder %s1008_s30, %s1319_s8  ;;  %p1325_p12 = scmp.lt.s32.totalorder %s1319_s8, %s1319_s8 }
 0x8cc   :  { %p1326_p13 = por %p1325_p12, %p1324_p11 }
 0x8ce   :  { %p1327_p0 = pnand %p1326_p13, %p1320_p10 }
 0x8d0   :  { %1330 = shalt.err (!%p1327_p0)
}
 0x8d1   :  { %1013 = dma.vmem_to_hbm [thread:$0]  %s1008_s30, 512, %s1744_s18, [#allocation6], %s1372_s24, %s1372_s24, %s1373_s5  }
 0x8d2   :  { %v1089_v28 = vld [vmem:[%s1741_s15] ss:$0 sm:$0xff]  ;;  %s1375_s16 = smov [#allocation8]  }
 0x8d3   :  { %s1019_s21 = sshll.u32 %s1375_s16, 4  ;;  %s1020_s21 = int_to_ptr.vmem [resolvable:$true] %s1019_s21 }
 0x8d4   :  { %s1339_s15 = scalar_lea.vmem %s1020_s21, 256  ;;  %p1344_p2 = scmp.lt.s32.totalorder %s1020_s21, %s1020_s21 }
 0x8d5   :  { %p1340_p1 = scmp.ne.s32.totalorder %s1020_s21, %s1339_s15  ;;  %p1345_p3 = scmp.lt.s32.totalorder %s1339_s15, %s1339_s15 }
 0x8d7   :  { %p1346_p4 = por %p1345_p3, %p1344_p2 }
 0x8d9   :  { %p1347_p5 = pnand %p1346_p4, %p1340_p1 }
 0x97a   :  { %v965_v33 = vpop.f32.mrf.mxu0 }
 0x97b   :  { %v966_v34 = vadd.f32 %v1089_v28, %v965_v33 }
 0x97c   :  { %v1236_v18 = vpop.f32.mrf.mxu0 }
 0x97d   :  { %v972_v35 = vmax.f32 %v966_v34, 0.0 }
 0x97e   :  { %v968_v36 = vpop.f32.mrf.mxu0 }
 0x97f   :  { %v974_v37 = vsub.f32 %v1497_v16, %v972_v35  ;;  %v969_v23 = vadd.f32 %v1089_v28, %v968_v36 }
 0x980   :  { %v1237_v38 = vpop.f32.mrf.mxu0 }
 0x981   :  { %976 = vst.msk [vmem:[#allocation8] sm:$0xff] %vm259_vm5, %v974_v37  ;;  %v973_v39 = vmax.f32 %v969_v23, 0.0 }
 0x983   :  { %v975_v40 = vsub.f32 %v1505_v19, %v973_v39 }
 0x985   :  { %977 = vst.msk [vmem:[#allocation8 + $0x8] sm:$0xff] %vm259_vm5, %v975_v40 }
 0x986   :  { %1350 = shalt.err (!%p1347_p5)
}
 0x987   :  { %1025 = dma.vmem_to_hbm [thread:$0]  %s1020_s21, 256, %s1745_s19, [#allocation9], %s1372_s24, %s1372_s24, %s1373_s5  }
 0x988   :  { %1359 = dma.done.wait [#allocation4], 256  }
 0x989   :  { %1360 = vsyncadd [#allocation4], 4294967040 }
 0x98a   :  { %1361 = dma.done.wait [#allocation6], 1024  }
 0x98b   :  { %1362 = vsyncadd [#allocation6], 4294966272 }
 0x98c   :  { %1363 = dma.done.wait [#allocation9], 256  }
 0x98d   :  { %1364 = vsyncadd [#allocation9], 4294967040 }
 0x98e   :  { %1038 = vsyncpa [#allocation4], 1 }
 0x98f   :  { %1039 = vsyncpa [#allocation6], 1 }
 0x990   :  { %1040 = vsyncpa [#allocation9], 1 }

// kernel: tpu_custom_call.1
= control target key start
LH: loop header
LB: loop body
LE: loop exit
PB: predicated region body
PF: predicated region fallthrough
CT: control target
= control target key end

     0   :  { %s1726_s0 = inlined_call_operand.vmem [shape: bf16[2,8,16], index: 0, kind: input, shape index: {}]   ;;  %s1727_s1 = inlined_call_operand.vmem [shape: f32[2,8,32], index: 1, kind: input, shape index: {}]   ;;  %s1728_s2 = inlined_call_operand.vmem [shape: bf16[2,8,8], index: 2, kind: input, shape index: {}]   ;;  %s1729_s3 = inlined_call_operand.vmem [shape: bf16[1,8,8], index: 3, kind: input, shape index: {}]   ;;  %s1730_s4 = inlined_call_operand.vmem [shape: bf16[16,32], index: 4, kind: input, shape index: {}]   ;;  %s1731_s5 = inlined_call_operand.vmem [shape: f32[1,32], index: 5, kind: input, shape index: {}]   ;;  %s1732_s6 = inlined_call_operand.vmem [shape: bf16[96,32], index: 6, kind: input, shape index: {}]   ;;  %s1733_s7 = inlined_call_operand.vmem [shape: f32[1,32], index: 7, kind: input, shape index: {}]   ;;  %s1734_s8 = inlined_call_operand.vmem [shape: bf16[96,32], index: 8, kind: input, shape index: {}]   ;;  %s1735_s9 = inlined_call_operand.vmem [shape: f32[1,32], index: 9, kind: input, shape index: {}]   ;;  %s1736_s10 = inlined_call_operand.vmem [shape: bf16[32,32], index: 10, kind: input, shape index: {}]   ;;  %s1737_s11 = inlined_call_operand.vmem [shape: f32[1,32], index: 11, kind: input, shape index: {}]   ;;  %s1738_s12 = inlined_call_operand.vmem [shape: bf16[32,32], index: 12, kind: input, shape index: {}]   ;;  %s1739_s13 = inlined_call_operand.vmem [shape: f32[1,32], index: 13, kind: input, shape index: {}]   ;;  %s1740_s14 = inlined_call_operand.vmem [shape: bf16[32,32], index: 14, kind: input, shape index: {}]   ;;  %s1741_s15 = inlined_call_operand.vmem [shape: f32[1,32], index: 15, kind: input, shape index: {}]   ;;  %s1742_s16 = inlined_call_operand.hbm [shape: f32[2,8,64], index: 16, kind: output, shape index: {0}]   ;;  %s1743_s17 = inlined_call_operand.hbm [shape: f32[2,2,8,32], index: 17, kind: output, shape index: {1}]   ;;  %s1744_s18 = inlined_call_operand.hbm [shape: f32[2,2,8,32], index: 18, kind: output, shape index: {2}]   ;;  %s1745_s19 = inlined_call_operand.hbm [shape: f32[2,8,32], index: 19, kind: output, shape index: {3}]  }
   0x1   :  { %1748 = sst [smem:[#allocation13_spill]] %s1726_s0 }
   0x2   :  { %1749 = sst [smem:[#allocation14_spill]] %s1727_s1 }
   0x3   :  { %1750 = sst [smem:[#allocation15_spill]] %s1728_s2 }
   0x4   :  { %1751 = sst [smem:[#allocation16_spill]] %s1729_s3 }
   0x5   :  { %25 = vsyncpa [#allocation4], 0 }
   0x6   :  { %26 = vsyncpa [#allocation6], 0  ;;  %v1249_v0 = vld [vmem:[%s1730_s4] sm:$0xff]   ;;  %v1365_v1 = vmov 0.0   ;;  %s1752_s1 = sld [smem:[#allocation13_spill]]  ;;  %vm1366_vm0 = vmmov 0  }
   0x7   :  { %1140 = vmatprep.subr.bf16.mxu0 %v1365_v1  ;;  %1146 = vmatprep.subr.bf16.mxu1 %v1365_v1  ;;  %vm83_vm1 = vcmask 130048  }
   0x8   :  { %1141 = vmatpush3.bf16.msra.mxu0 %v1249_v0  ;;  %1142 = vmatprep.mubr.msk.bf16.mxu0 %vm1366_vm0, %v1365_v1 }
   0x9   :  { %1148 = vmatprep.mubr.msk.bf16.mxu1 %vm1366_vm0, %v1365_v1  ;;  %1152 = vmatprep.subr.bf16.mxu0 %v1365_v1 }
   0xc   :  { %v1250_v2 = vld [vmem:[%s1752_s1] sm:$0xff]  }
   0xd   :  { %1143 = vmatmul.mubr.msk.bf16.vlgmr.msra.gmra.mxu0 %vm83_vm1, %v1250_v2 }
   0xe   :  { %1154 = vmatprep.mubr.msk.bf16.mxu0 %vm1366_vm0, %v1365_v1 }
   0xf   :  { %27 = vsyncpa [#allocation9], 0  ;;  %v1041_v3 = vld [vmem:[%s1731_s5] ss:$0 sm:$0xff]  ;;  %s1753_s24 = sld [smem:[#allocation14_spill]]  ;;  %vm163_vm2 = vcmask 1043456  }
  0x10   :  { %vm154_vm3 = vcmask 257024   ;;  %s1754_s27 = sld [smem:[#allocation15_spill]]  ;;  %vm159_vm4 = vcmask 64512   ;;  %vm259_vm5 = vcmask 261120   ;;  %s1367_s0 = smov 32   ;;  %v1251_v46 = vld [vmem:[%s1732_s6 + $0x28] sm:$0xff]  }
  0x11   :  { %v1252_v47 = vld [vmem:[%s1732_s6 + $0x20] sm:$0xff]   ;;  %v1253_v48 = vld [vmem:[%s1732_s6 + $0x18] sm:$0xff]   ;;  %vm274_vm6 = vcmask 519424   ;;  %v1254_v51 = vld [vmem:[%s1732_s6 + $0x10] sm:$0xff]   ;;  %s1368_s26 = smov 64   ;;  %vm384_vm7 = vcmask 781824  }
  0x12   :  { %v1255_v52 = vld [vmem:[%s1732_s6 + $0x8] sm:$0xff]   ;;  %v1256_v54 = vld [vmem:[%s1732_s6] sm:$0xff]   ;;  %vm449_vm8 = vcmask 785408   ;;  %s1755_s1 = sld [smem:[#allocation16_spill]]  ;;  %s1369_s30 = smov 96   ;;  %vm829_vm9 = vcmask 523520  }
  0x13   :  { %s1371_s2 = smov [#allocation3]  }
  0x15   :  { %v1497_v16 = vld [vmem:[%s1753_s24] sm:$0xff]  ;;  %v1505_v19 = vld [vmem:[%s1753_s24 + $0x8] sm:$0xff] }
  0x16   :  { %v144_v24 = vld [vmem:[%s1754_s27] sm:$0xf]  ;;  %v145_v27 = vld [vmem:[%s1754_s27 + $0x4] sm:$0xf] }
  0xcd   :  { %v121_v4 = vpop.f32.mrf.mxu0 }
  0xce   :  { %v122_v5 = vadd.f32 %v1041_v3, %v121_v4 }
  0xcf   :  { %v1144_v6 = vpop.f32.mrf.mxu0 }
  0xd0   :  { %v1045_v7 = vmul.f32 -1.442695, %v122_v5 }
  0xd1   :  { %v124_v8 = vpop.f32.mrf.mxu0 }
  0xd2   :  { %1271 = vpow2.f32 %v1045_v7  ;;  %v125_v9 = vadd.f32 %v1041_v3, %v124_v8  ;;  %v1258_v8 = vld [vmem:[%s1736_s10 + $0x8] sm:$0xff]  }
  0xd3   :  { %v1145_v10 = vpop.f32.mrf.mxu0 }
  0xd4   :  { %v1046_v11 = vmul.f32 -1.442695, %v125_v9  ;;  %v1259_v9 = vld [vmem:[%s1736_s10] sm:$0xff]  }
  0xd5   :  { %v1057_v10 = vld [vmem:[%s1733_s7] ss:$0 sm:$0xff] }
  0xd6   :  { %1273 = vpow2.f32 %v1046_v11 }
  0xdf   :  { %v1272_v12 = vpop.eup %1271 }
  0xe0   :  { %v134_v13 = vadd.f32 1.0, %v1272_v12 }
  0xe2   :  { %1275 = vrcp.f32 %v134_v13 }
  0xe3   :  { %v1274_v14 = vpop.eup %1273 }
  0xe4   :  { %v135_v15 = vadd.f32 1.0, %v1274_v14 }
  0xe6   :  { %1277 = vrcp.f32 %v135_v15 }
  0xef   :  { %v1276_v17 = vpop.eup %1275 }
  0xf0   :  { %v1500_v18 = vmul.f32 %v1276_v17, %v1497_v16 }
  0xf2   :  { %v1093_v20 = vpack.c.bf16 %v1500_v18, %v1500_v18  ;;  %v253_v29 = vmul.f32 0.05, %v1500_v18 }
  0xf3   :  { %v1278_v21 = vpop.eup %1277 }
  0xf4   :  { %v165_v22 = vsel %vm163_vm2, %v1093_v20, 0  ;;  %v1511_v23 = vmul.f32 %v1278_v21, %v1505_v19  ;;  %155 = vst.msk [vmem:[#allocation2] sm:$0xf] %vm154_vm3, %v1093_v20  ;;  %v1066_v21 = vld [vmem:[%s1737_s11] ss:$0 sm:$0xff] }
  0xf5   :  { %1147 = vmatpush3.bf16.msra.mxu1 %v165_v22 }
  0xf6   :  { %v1094_v25 = vpack.c.bf16 %v1511_v23, %v1511_v23  ;;  %1158 = vmatprep.subr.bf16.mxu1 %v1365_v1  ;;  %v254_v35 = vmul.f32 0.05, %v1511_v23 }
  0xf8   :  { %1149 = vmatmul.mubr.msk.bf16.vlgmr.msra.gmra.mxu1 %vm159_vm4, %v144_v24  ;;  %v211_v26 = vsel %vm163_vm2, %v1094_v25, 0  ;;  %156 = vst.msk [vmem:[#allocation2 + $0x4] sm:$0xf] %vm154_vm3, %v1094_v25 }
  0xf9   :  { %1153 = vmatpush3.bf16.msra.mxu0 %v211_v26  ;;  %1160 = vmatprep.mubr.msk.bf16.mxu1 %vm1366_vm0, %v1365_v1 }
  0xfa   :  { %1164 = vmatprep.subr.bf16.mxu0 %v1365_v1 }
  0xfc   :  { %1155 = vmatmul.mubr.msk.bf16.vlgmr.msra.gmra.mxu0 %vm159_vm4, %v145_v27 }
  0xfd   :  { %1166 = vmatprep.mubr.msk.bf16.mxu0 %vm1366_vm0, %v1365_v1 }
 0x1b8   :  { %v201_v28 = vpop.f32.mrf.mxu1 }
 0x1b9   :  { %v255_v30 = vmul.f32 0.95, %v201_v28 }
 0x1ba   :  { %v1150_v31 = vpop.f32.mrf.mxu1 }
 0x1bb   :  { %v257_v32 = vadd.f32 %v255_v30, %v253_v29 }
 0x1bc   :  { %v204_v33 = vpop.f32.mrf.mxu1  ;;  %v247_v34 = vpop.f32.mrf.mxu0 }
 0x1bd   :  { %260 = vst.msk [vmem:[#allocation5] sm:$0xff] %vm259_vm5, %v257_v32  ;;  %v256_v36 = vmul.f32 0.95, %v247_v34  ;;  %v1095_v37 = vpack.c.bf16 %v257_v32, %v257_v32 }
 0x1be   :  { %v1151_v38 = vpop.f32.mrf.mxu1  ;;  %v1156_v39 = vpop.f32.mrf.mxu0 }
 0x1bf   :  { %v258_v40 = vadd.f32 %v256_v36, %v254_v35  ;;  %268 = vrot.lane.b32.xlu0 %v1095_v37, %s1367_s0  ;;  %v280_v41 = vsel %vm163_vm2, %v1095_v37, 0 }
 0x1c0   :  { %v250_v42 = vpop.f32.mrf.mxu0  ;;  %1159 = vmatpush3.bf16.msra.mxu1 %v280_v41 }
 0x1c1   :  { %261 = vst.msk [vmem:[#allocation5 + $0x8] sm:$0xff] %vm259_vm5, %v258_v40  ;;  %v1096_v43 = vpack.c.bf16 %v258_v40, %v258_v40  ;;  %1170 = vmatprep.subr.bf16.mxu1 %v1365_v1 }
 0x1c2   :  { %v1157_v44 = vpop.f32.mrf.mxu0 }
 0x1c3   :  { %1161 = vmatmul.mubr.msk.bf16.vlgmr.msra.gmra.mxu1 %vm159_vm4, %v144_v24  ;;  %270 = vrot.lane.b32.xlu0 %v1096_v43, %s1367_s0  ;;  %v323_v45 = vsel %vm163_vm2, %v1096_v43, 0 }
 0x1c4   :  { %1165 = vmatpush3.bf16.msra.mxu0 %v323_v45  ;;  %1182 = vmatprep.mubr.msk.bf16.mxu1 %vm1366_vm0, %v1365_v1 }
 0x1c5   :  { %1186 = vmatprep.subr.bf16.mxu0 %v1365_v1  ;;  %1171 = vmatpush3.bf16.msra.mxu1 %v1251_v46 }
 0x1c6   :  { %1172 = vmatprep.subr.bf16.mxu1 %v1365_v1 }
 0x1c7   :  { %1167 = vmatmul.mubr.msk.bf16.vlgmr.msra.gmra.mxu0 %vm159_vm4, %v145_v27 }
 0x1c8   :  { %1190 = vmatprep.mubr.msk.bf16.mxu0 %vm1366_vm0, %v1365_v1  ;;  %1187 = vmatpush3.bf16.msra.mxu0 %v1258_v8 }
 0x1c9   :  { %1173 = vmatpush3.bf16.msra.mxu1 %v1252_v47  ;;  %1188 = vmatprep.subr.bf16.mxu0 %v1365_v1  ;;  %v1260_v47 = vld [vmem:[%s1734_s8 + $0x28] sm:$0xff]  }
 0x1ca   :  { %1174 = vmatprep.subr.bf16.mxu1 %v1365_v1 }
 0x1cc   :  { %1189 = vmatpush3.bf16.msra.mxu0 %v1259_v9 }
 0x1cd   :  { %1175 = vmatpush3.bf16.msra.mxu1 %v1253_v48  ;;  %1194 = vmatprep.subr.bf16.mxu0 %v1365_v1  ;;  %v1261_v48 = vld [vmem:[%s1734_s8 + $0x20] sm:$0xff]  }
 0x1ce   :  { %1176 = vmatprep.subr.bf16.mxu1 %v1365_v1 }
 0x1d1   :  { %1177 = vmatpush3.bf16.msra.mxu1 %v1254_v51 }
 0x1d2   :  { %1178 = vmatprep.subr.bf16.mxu1 %v1365_v1 }
 0x1d5   :  { %1179 = vmatpush3.bf16.msra.mxu1 %v1255_v52  ;;  %v1264_v52 = vld [vmem:[%s1734_s8 + $0x8] sm:$0xff]  }
 0x1d6   :  { %1180 = vmatprep.subr.bf16.mxu1 %v1365_v1 }
 0x1d9   :  { %1181 = vmatpush3.bf16.msra.mxu1 %v1256_v54 }
 0x1da   :  { %1206 = vmatprep.subr.bf16.mxu1 %v1365_v1 }
 0x231   :  { %v269_v49 = vpop.permute.xlu0 %268 }
 0x232   :  { %275 = vst.msk [vmem:[#allocation2] sm:$0xf] %vm274_vm6, %v269_v49  ;;  %v1262_v49 = vld [vmem:[%s1734_s8 + $0x18] sm:$0xff]  }
 0x235   :  { %v271_v50 = vpop.permute.xlu0 %270 }
 0x236   :  { %276 = vst.msk [vmem:[#allocation2 + $0x4] sm:$0xf] %vm274_vm6, %v271_v50  ;;  %v1263_v50 = vld [vmem:[%s1734_s8 + $0x10] sm:$0xff]  }
 0x283   :  { %v316_v53 = vpop.f32.mrf.mxu1 }
 0x284   :  { %v365_v55 = vmul.f32 0.95, %v316_v53  ;;  %v1265_v53 = vld [vmem:[%s1734_s8] sm:$0xff]  }
 0x285   :  { %v1162_v56 = vpop.f32.mrf.mxu1 }
 0x286   :  { %v367_v57 = vadd.f32 %v365_v55, %v253_v29 }
 0x287   :  { %v319_v58 = vpop.f32.mrf.mxu1  ;;  %v359_v59 = vpop.f32.mrf.mxu0 }
 0x288   :  { %370 = vst.msk [vmem:[#allocation5 + $0x10] sm:$0xff] %vm259_vm5, %v367_v57  ;;  %v366_v60 = vmul.f32 0.95, %v359_v59  ;;  %v1097_v61 = vpack.c.bf16 %v367_v57, %v367_v57 }
 0x289   :  { %v1163_v62 = vpop.f32.mrf.mxu1  ;;  %v1168_v63 = vpop.f32.mrf.mxu0 }
 0x28a   :  { %v368_v0 = vadd.f32 %v366_v60, %v254_v35  ;;  %378 = vrot.lane.b32.xlu1 %v1097_v61, %s1368_s26 }
 0x28b   :  { %v362_v2 = vpop.f32.mrf.mxu0 }
 0x28c   :  { %371 = vst.msk [vmem:[#allocation5 + $0x18] sm:$0xff] %vm259_vm5, %v368_v0  ;;  %v1098_v3 = vpack.c.bf16 %v368_v0, %v368_v0 }
 0x28d   :  { %v1169_v4 = vpop.f32.mrf.mxu0 }
 0x28e   :  { %380 = vrot.lane.b32.xlu1 %v1098_v3, %s1368_s26  ;;  %v1267_v3 = vld [vmem:[%s1738_s12 + $0x8] sm:$0xff]   ;;  %v1268_v4 = vld [vmem:[%s1738_s12] sm:$0xff]  }
 0x2fc   :  { %v379_v5 = vpop.permute.xlu1 %378 }
 0x2fd   :  { %385 = vst.msk [vmem:[#allocation2] sm:$0xf] %vm384_vm7, %v379_v5  ;;  %v1076_v5 = vld [vmem:[%s1735_s9] ss:$0 sm:$0xff] }
 0x300   :  { %v381_v6 = vpop.permute.xlu1 %380 }
 0x301   :  { %386 = vst.msk [vmem:[#allocation2 + $0x4] sm:$0xf] %vm384_vm7, %v381_v6 }
 0x308   :  { %v1257_v7 = vld [vmem:[#allocation2] sm:$0xff]  }
 0x309   :  { %1183 = vmatmul.mubr.msk.bf16.vlgmr.msra.gmra.mxu1 %vm449_vm8, %v1257_v7 }
 0x30a   :  { %1218 = vmatprep.mubr.msk.bf16.mxu1 %vm1366_vm0, %v1365_v1  ;;  %1207 = vmatpush3.bf16.msra.mxu1 %v1260_v47 }
 0x30b   :  { %1208 = vmatprep.subr.bf16.mxu1 %v1365_v1 }
 0x30e   :  { %1209 = vmatpush3.bf16.msra.mxu1 %v1261_v48 }
 0x30f   :  { %1210 = vmatprep.subr.bf16.mxu1 %v1365_v1 }
 0x312   :  { %1211 = vmatpush3.bf16.msra.mxu1 %v1262_v49 }
 0x313   :  { %1212 = vmatprep.subr.bf16.mxu1 %v1365_v1 }
 0x316   :  { %1213 = vmatpush3.bf16.msra.mxu1 %v1263_v50 }
 0x317   :  { %1214 = vmatprep.subr.bf16.mxu1 %v1365_v1 }
 0x31a   :  { %1215 = vmatpush3.bf16.msra.mxu1 %v1264_v52 }
 0x31b   :  { %1216 = vmatprep.subr.bf16.mxu1 %v1365_v1 }
 0x31e   :  { %1217 = vmatpush3.bf16.msra.mxu1 %v1265_v53 }
 0x3c9   :  { %v487_v11 = vpop.f32.mrf.mxu1 }
 0x3ca   :  { %v488_v12 = vadd.f32 %v1057_v10, %v487_v11 }
 0x3cb   :  { %v1184_v13 = vpop.f32.mrf.mxu1 }
 0x3cc   :  { %494 = vst.msk [vmem:[#allocation3] sm:$0xff] %vm259_vm5, %v488_v12  ;;  %v1269_v13 = vld [vmem:[%s1740_s14 + $0x8] sm:$0xff]  }
 0x3cd   :  { %v490_v14 = vpop.f32.mrf.mxu1 }
 0x3ce   :  { %v491_v15 = vadd.f32 %v1057_v10, %v490_v14  ;;  %v1270_v14 = vld [vmem:[%s1740_s14] sm:$0xff]   ;;  %s1370_s14 = smov [#allocation5]  }
 0x3cf   :  { %v1185_v17 = vpop.f32.mrf.mxu1  ;;  %s995_s22 = sshll.u32 %s1370_s14, 4  ;;  %s996_s22 = int_to_ptr.vmem [resolvable:$true] %s995_s22 }
 0x3d0   :  { %495 = vst.msk [vmem:[#allocation3 + $0x8] sm:$0xff] %vm259_vm5, %v491_v15  ;;  %v496_v20 = vpack.c.bf16 %v491_v15, %v488_v12  ;;  %s1279_s23 = scalar_lea.vmem %s996_s22, 512  ;;  %p1284_p1 = scmp.lt.s32.totalorder %s996_s22, %s996_s22 }
 0x3d1   :  { %p1280_p0 = scmp.ne.s32.totalorder %s996_s22, %s1279_s23  ;;  %p1285_p2 = scmp.lt.s32.totalorder %s1279_s23, %s1279_s23 }
 0x3d2   :  { %1191 = vmatmul.mubr.msk.bf16.vlgmr.msra.gmra.mxu0 %vm259_vm5, %v496_v20  ;;  %v1085_v20 = vld [vmem:[%s1739_s13] ss:$0 sm:$0xff]  ;;  %s983_s13 = sshll.u32 %s1371_s2, 4  ;;  %s984_s13 = int_to_ptr.vmem [resolvable:$true] %s983_s13 }
 0x3d3   :  { %1196 = vmatprep.mubr.msk.bf16.mxu0 %vm1366_vm0, %v1365_v1  ;;  %p1286_p3 = por %p1285_p2, %p1284_p1 }
 0x3d5   :  { %p1287_p4 = pnand %p1286_p3, %p1280_p0 }
 0x492   :  { %v557_v22 = vpop.f32.mrf.mxu0 }
 0x493   :  { %v558_v24 = vadd.f32 %v1066_v21, %v557_v22 }
 0x494   :  { %v1192_v25 = vpop.f32.mrf.mxu0 }
 0x495   :  { %v564_v26 = vmax.f32 %v558_v24, 0.0 }
 0x496   :  { %v560_v27 = vpop.f32.mrf.mxu0 }
 0x497   :  { %v1603_v28 = vsub.f32 %v1500_v18, %v564_v26  ;;  %v561_v29 = vadd.f32 %v1066_v21, %v560_v27 }
 0x498   :  { %v1193_v30 = vpop.f32.mrf.mxu0 }
 0x499   :  { %v1099_v31 = vpack.c.bf16 %v1603_v28, %v1603_v28  ;;  %v565_v32 = vmax.f32 %v561_v29, 0.0 }
 0x49b   :  { %577 = vst.msk [vmem:[#allocation2] sm:$0xf] %vm154_vm3, %v1099_v31  ;;  %v1609_v33 = vsub.f32 %v1511_v23, %v565_v32  ;;  %v568_v23 = vld [vmem:[%s1755_s1] sm:$0xf] }
 0x49d   :  { %v1100_v34 = vpack.c.bf16 %v1609_v33, %v1609_v33  ;;  %580 = vrot.lane.b32.xlu0 %v1609_v33, %s1367_s0 }
 0x49f   :  { %578 = vst.msk [vmem:[#allocation2 + $0x4] sm:$0xf] %vm154_vm3, %v1100_v34 }
 0x50f   :  { %v581_v18 = vpop.permute.xlu0 %580 }
 0x510   :  { %v583_v35 = vsel %vm259_vm5, %v1603_v28, %v581_v18 }
 0x511   :  { %v584_v36 = vpack.c.bf16 %v583_v35, %v583_v35  ;;  %v631_v39 = vmul.f32 0.05, %v583_v35 }
 0x513   :  { %v589_v37 = vsel %vm163_vm2, %v584_v36, 0 }
 0x514   :  { %1195 = vmatpush3.bf16.msra.mxu0 %v589_v37 }
 0x515   :  { %1200 = vmatprep.subr.bf16.mxu0 %v1365_v1 }
 0x517   :  { %1197 = vmatmul.mubr.msk.bf16.vlgmr.msra.gmra.mxu0 %vm159_vm4, %v568_v23 }
 0x518   :  { %1202 = vmatprep.mubr.msk.bf16.mxu0 %vm1366_vm0, %v1365_v1 }
 0x5d7   :  { %v625_v38 = vpop.f32.mrf.mxu0 }
 0x5d8   :  { %v632_v40 = vmul.f32 0.95, %v625_v38 }
 0x5d9   :  { %v1198_v41 = vpop.f32.mrf.mxu0 }
 0x5da   :  { %v633_v42 = vadd.f32 %v632_v40, %v631_v39 }
 0x5db   :  { %v628_v43 = vpop.f32.mrf.mxu0 }
 0x5dc   :  { %634 = vst.msk [vmem:[#allocation7] sm:$0xff] %vm259_vm5, %v633_v42  ;;  %v635_v44 = vpack.c.bf16 %v633_v42, %v633_v42 }
 0x5dd   :  { %v1199_v45 = vpop.f32.mrf.mxu0 }
 0x5de   :  { %639 = vrot.lane.b32.xlu1 %v635_v44, %s1367_s0  ;;  %649 = vst.msk [vmem:[#allocation2 + $0x4] sm:$0xf] %vm274_vm6, %v635_v44  ;;  %v651_v46 = vsel %vm163_vm2, %v635_v44, 0 }
 0x5df   :  { %1201 = vmatpush3.bf16.msra.mxu0 %v651_v46 }
 0x5e0   :  { %1222 = vmatprep.subr.bf16.mxu0 %v1365_v1 }
 0x5e2   :  { %1203 = vmatmul.mubr.msk.bf16.vlgmr.msra.gmra.mxu0 %vm159_vm4, %v568_v23 }
 0x5e3   :  { %1226 = vmatprep.mubr.msk.bf16.mxu0 %vm1366_vm0, %v1365_v1  ;;  %1223 = vmatpush3.bf16.msra.mxu0 %v1267_v3 }
 0x5e4   :  { %1224 = vmatprep.subr.bf16.mxu0 %v1365_v1 }
 0x5e7   :  { %1225 = vmatpush3.bf16.msra.mxu0 %v1268_v4 }
 0x5e8   :  { %1230 = vmatprep.subr.bf16.mxu0 %v1365_v1 }
 0x650   :  { %v640_v51 = vpop.permute.xlu1 %639 }
 0x651   :  { %642 = vst.msk [vmem:[#allocation2] sm:$0xf] %vm274_vm6, %v640_v51 }
 0x6a2   :  { %v687_v54 = vpop.f32.mrf.mxu0 }
 0x6a3   :  { %v693_v55 = vmul.f32 0.95, %v687_v54 }
 0x6a4   :  { %v1204_v56 = vpop.f32.mrf.mxu0 }
 0x6a5   :  { %v694_v57 = vadd.f32 %v693_v55, %v631_v39 }
 0x6a6   :  { %v690_v58 = vpop.f32.mrf.mxu0 }
 0x6a7   :  { %696 = vst.msk [vmem:[#allocation7 + $0x10] sm:$0xff] %vm259_vm5, %v694_v57  ;;  %v1102_v59 = vpack.c.bf16 %v694_v57, %v694_v57 }
 0x6a8   :  { %v1205_v60 = vpop.f32.mrf.mxu0 }
 0x6a9   :  { %711 = vrot.lane.b32.xlu1 %v1102_v59, %s1367_s0  ;;  %701 = vrot.lane.b32.xlu0 %v1102_v59, %s1368_s26 }
 0x6ad   :  { %706 = vrot.lane.b32.xlu1 %v694_v57, %s1369_s30  ;;  %644 = vrot.lane.b32.xlu0 %v633_v42, %s1369_s30 }
 0x71b   :  { %v712_v61 = vpop.permute.xlu1 %711  ;;  %v702_v62 = vpop.permute.xlu0 %701 }
 0x71c   :  { %714 = vst.msk [vmem:[#allocation2 + $0x4] sm:$0xf] %vm384_vm7, %v712_v61  ;;  %704 = vst.msk [vmem:[#allocation2] sm:$0xf] %vm384_vm7, %v702_v62 }
 0x71f   :  { %v707_v63 = vpop.permute.xlu1 %706  ;;  %v645_v0 = vpop.permute.xlu0 %644 }
 0x720   :  { %710 = vst.msk [vmem:[#allocation7 + $0x18] sm:$0xff] %vm259_vm5, %v707_v63  ;;  %648 = vst.msk [vmem:[#allocation7 + $0x8] sm:$0xff] %vm259_vm5, %v645_v0 }
 0x723   :  { %v1266_v2 = vld [vmem:[#allocation2] sm:$0xff]  }
 0x724   :  { %1219 = vmatmul.mubr.msk.bf16.vlgmr.msra.gmra.mxu1 %vm449_vm8, %v1266_v2 }
 0x7e4   :  { %v814_v6 = vpop.f32.mrf.mxu1 }
 0x7e5   :  { %v815_v7 = vadd.f32 %v1076_v5, %v814_v6 }
 0x7e6   :  { %v1220_v8 = vpop.f32.mrf.mxu1 }
 0x7e7   :  { %823 = vrot.lane.b32.xlu0 %v815_v7, %s1367_s0 }
 0x7e8   :  { %v817_v9 = vpop.f32.mrf.mxu1 }
 0x7e9   :  { %v818_v10 = vadd.f32 %v1076_v5, %v817_v9 }
 0x7ea   :  { %v1221_v11 = vpop.f32.mrf.mxu1 }
 0x7eb   :  { %v832_v12 = vpack.c.bf16 %v818_v10, %v815_v7  ;;  %825 = vrot.lane.b32.xlu1 %v818_v10, %s1367_s0 }
 0x7ed   :  { %1227 = vmatmul.mubr.msk.bf16.vlgmr.msra.gmra.mxu0 %vm259_vm5, %v832_v12 }
 0x7ee   :  { %1234 = vmatprep.mubr.msk.bf16.mxu0 %vm1366_vm0, %v1365_v1  ;;  %1231 = vmatpush3.bf16.msra.mxu0 %v1269_v13 }
 0x7ef   :  { %1232 = vmatprep.subr.bf16.mxu0 %v1365_v1 }
 0x7f2   :  { %1233 = vmatpush3.bf16.msra.mxu0 %v1270_v14 }
 0x859   :  { %v824_v15 = vpop.permute.xlu0 %823 }
 0x85a   :  { %830 = vst.msk [vmem:[#allocation3] sm:$0xff] %vm829_vm9, %v824_v15 }
 0x85d   :  { %v826_v17 = vpop.permute.xlu1 %825 }
 0x85e   :  { %831 = vst.msk [vmem:[#allocation3 + $0x8] sm:$0xff] %vm829_vm9, %v826_v17 }
 0x8ad   :  { %v893_v21 = vpop.f32.mrf.mxu0 }
 0x8ae   :  { %v894_v22 = vadd.f32 %v1085_v20, %v893_v21 }
 0x8af   :  { %v1228_v24 = vpop.f32.mrf.mxu0 }
 0x8b0   :  { %v900_v26 = vmax.f32 %v894_v22, 0.0 }
 0x8b1   :  { %v896_v25 = vpop.f32.mrf.mxu0 }
 0x8b2   :  { %v897_v1 = vadd.f32 %v1085_v20, %v896_v25  ;;  %v902_v30 = vsub.f32 %v1603_v28, %v900_v26 }
 0x8b3   :  { %v1229_v27 = vpop.f32.mrf.mxu0 }
 0x8b4   :  { %v901_v29 = vmax.f32 %v897_v1, 0.0 }
 0x8b6   :  { %v903_v31 = vsub.f32 %v1609_v33, %v901_v29 }
 0x8b8   :  { %v904_v32 = vpack.c.bf16 %v903_v31, %v902_v30 }
 0x8ba   :  { %1235 = vmatmul.mubr.msk.bf16.vlgmr.msra.gmra.mxu0 %vm259_vm5, %v904_v32 }
 0x8bb   :  { %1290 = shalt.err (!%p1287_p4)
}
 0x8bc   :  { %s1372_s24 = smov 128   ;;  %s1373_s5 = smov 8  }
 0x8bd   :  { %1001 = dma.vmem_to_hbm [thread:$0]  %s996_s22, 512, %s1743_s17, [#allocation6], %s1372_s24, %s1372_s24, %s1373_s5  }
 0x8be   :  { %s1299_s6 = scalar_lea.vmem %s984_s13, 256  ;;  %p1304_p6 = scmp.lt.s32.totalorder %s984_s13, %s984_s13 }
 0x8bf   :  { %p1300_p5 = scmp.ne.s32.totalorder %s984_s13, %s1299_s6  ;;  %p1305_p7 = scmp.lt.s32.totalorder %s1299_s6, %s1299_s6 }
 0x8c1   :  { %p1306_p8 = por %p1305_p7, %p1304_p6 }
 0x8c3   :  { %p1307_p9 = pnand %p1306_p8, %p1300_p5 }
 0x8c5   :  { %1310 = shalt.err (!%p1307_p9)
}
 0x8c6   :  { %989 = dma.vmem_to_hbm [thread:$0]  %s984_s13, 256, %s1742_s16, [#allocation4], %s1372_s24, %s1372_s24, %s1373_s5  }
 0x8c7   :  { %s1374_s29 = smov [#allocation7]  }
 0x8c8   :  { %s1007_s30 = sshll.u32 %s1374_s29, 4  ;;  %s1008_s30 = int_to_ptr.vmem [resolvable:$true] %s1007_s30 }
 0x8c9   :  { %s1319_s8 = scalar_lea.vmem %s1008_s30, 512  ;;  %p1324_p11 = scmp.lt.s32.totalorder %s1008_s30, %s1008_s30 }
 0x8ca   :  { %p1320_p10 = scmp.ne.s32.totalorder %s1008_s30, %s1319_s8  ;;  %p1325_p12 = scmp.lt.s32.totalorder %s1319_s8, %s1319_s8 }
 0x8cc   :  { %p1326_p13 = por %p1325_p12, %p1324_p11 }
 0x8ce   :  { %p1327_p0 = pnand %p1326_p13, %p1320_p10 }
 0x8d0   :  { %1330 = shalt.err (!%p1327_p0)
}
 0x8d1   :  { %1013 = dma.vmem_to_hbm [thread:$0]  %s1008_s30, 512, %s1744_s18, [#allocation6], %s1372_s24, %s1372_s24, %s1373_s5  }
 0x8d2   :  { %v1089_v28 = vld [vmem:[%s1741_s15] ss:$0 sm:$0xff]  ;;  %s1375_s16 = smov [#allocation8]  }
 0x8d3   :  { %s1019_s21 = sshll.u32 %s1375_s16, 4  ;;  %s1020_s21 = int_to_ptr.vmem [resolvable:$true] %s1019_s21 }
 0x8d4   :  { %s1339_s15 = scalar_lea.vmem %s1020_s21, 256  ;;  %p1344_p2 = scmp.lt.s32.totalorder %s1020_s21, %s1020_s21 }
 0x8d5   :  { %p1340_p1 = scmp.ne.s32.totalorder %s1020_s21, %s1339_s15  ;;  %p1345_p3 = scmp.lt.s32.totalorder %s1339_s15, %s1339_s15 }
 0x8d7   :  { %p1346_p4 = por %p1345_p3, %p1344_p2 }
 0x8d9   :  { %p1347_p5 = pnand %p1346_p4, %p1340_p1 }
 0x97a   :  { %v965_v33 = vpop.f32.mrf.mxu0 }
 0x97b   :  { %v966_v34 = vadd.f32 %v1089_v28, %v965_v33 }
 0x97c   :  { %v1236_v18 = vpop.f32.mrf.mxu0 }
 0x97d   :  { %v972_v35 = vmax.f32 %v966_v34, 0.0 }
 0x97e   :  { %v968_v36 = vpop.f32.mrf.mxu0 }
 0x97f   :  { %v974_v37 = vsub.f32 %v1497_v16, %v972_v35  ;;  %v969_v23 = vadd.f32 %v1089_v28, %v968_v36 }
 0x980   :  { %v1237_v38 = vpop.f32.mrf.mxu0 }
 0x981   :  { %976 = vst.msk [vmem:[#allocation8] sm:$0xff] %vm259_vm5, %v974_v37  ;;  %v973_v39 = vmax.f32 %v969_v23, 0.0 }
 0x983   :  { %v975_v40 = vsub.f32 %v1505_v19, %v973_v39 }
 0x985   :  { %977 = vst.msk [vmem:[#allocation8 + $0x8] sm:$0xff] %vm259_vm5, %v975_v40 }
 0x986   :  { %1350 = shalt.err (!%p1347_p5)
}
 0x987   :  { %1025 = dma.vmem_to_hbm [thread:$0]  %s1020_s21, 256, %s1745_s19, [#allocation9], %s1372_s24, %s1372_s24, %s1373_s5  }
 0x988   :  { %1359 = dma.done.wait [#allocation4], 256  }
 0x989   :  { %1360 = vsyncadd [#allocation4], 4294967040 }
 0x98a   :  { %1361 = dma.done.wait [#allocation6], 1024  }
 0x98b   :  { %1362 = vsyncadd [#allocation6], 4294966272 }
 0x98c   :  { %1363 = dma.done.wait [#allocation9], 256  }
 0x98d   :  { %1364 = vsyncadd [#allocation9], 4294967040 }
 0x98e   :  { %1038 = vsyncpa [#allocation4], 1 }
 0x98f   :  { %1039 = vsyncpa [#allocation6], 1 }
 0x990   :  { %1040 = vsyncpa [#allocation9], 1 }

</bundles_post_ra>
